<compile_context>
chip_gen: v7x
topology: tpu7x:2x2x1
jax: 0.10.0
libtpu: 0.0.40
codegen_flags: <defaults>
</compile_context>

<pallas_src>
import functools

import jax
import jax.numpy as jnp
from jax.experimental import pallas as pl
from jax.experimental.pallas import tpu as pltpu

_LANE = 128
_SUBLANE = 8
_MAX_BLOCK_BATCH = 2048


def _round_up(x, m):
    return (x + m - 1) // m * m


def _num_tensorcores():
    """v7x has 2 TensorCores per chip; v5e/v6e have 1. Fallback: 1."""
    try:
        kind = jax.devices()[0].device_kind.lower()
        return 2 if "7" in kind else 1
    except Exception:  # pragma: no cover - defensive
        return 1


def _mlp_kernel(x_ref, w1_ref, b1_ref, w2_ref, b2_ref, o_ref):
    # x_ref:  (bm, input_dim)   f32  (cast to bf16 in-kernel for the MXU)
    # w1_ref: (input_dim, hidden) bf16     b1_ref: (1, hidden) f32
    # w2_ref: (hidden, n_out)    bf16      b2_ref: (1, n_out)  f32
    # o_ref:  (bm, n_out) f32
    x = x_ref[...].astype(jnp.bfloat16)
    h = jnp.dot(x, w1_ref[...], preferred_element_type=jnp.float32)
    h = jnp.maximum(h + b1_ref[...], 0.0)            # bias + ReLU in f32 (VPU)
    # Dropout(0.3): identity in eval mode.
    out = jnp.dot(h.astype(jnp.bfloat16), w2_ref[...],
                  preferred_element_type=jnp.float32)
    o_ref[...] = (out + b2_ref[...]).astype(o_ref.dtype)


def prepare_params(w1, b1, w2, b2):
    """One-time conversion of static params to kernel-ready form.

    Returns ((w1_bf16, b1_f32, w2_bf16_padded, b2_f32_padded), output_dim) where
    the second-layer weight/bias are zero-padded to a lane-dense multiple of 128.
    Call once at init; pass the tuple to classifier_forward on every call.
    """
    output_dim = w2.shape[1]
    n_out = _round_up(output_dim, _LANE)
    b1 = jnp.asarray(b1).reshape(1, -1)
    b2 = jnp.asarray(b2).reshape(1, -1)
    if n_out != output_dim:
        w2 = jnp.pad(w2, ((0, 0), (0, n_out - output_dim)))
        b2 = jnp.pad(b2, ((0, 0), (0, n_out - output_dim)))
    params = (
        jnp.asarray(w1, jnp.bfloat16),
        jnp.asarray(b1, jnp.float32),
        jnp.asarray(w2, jnp.bfloat16),
        jnp.asarray(b2, jnp.float32),
    )
    return params, output_dim


@functools.partial(
    jax.jit, static_argnames=("output_dim", "block_batch", "training"))
def classifier_forward(x, w1, b1, w2, b2, *, output_dim,
                       block_batch=None, training=False):
    """Forward pass. w1/b1/w2/b2 must come from prepare_params()."""
    if training:
        # TODO(synk): training-mode dropout not implemented; enforce eval semantics.
        raise NotImplementedError("only eval-mode (dropout = identity) is supported")

    batch, input_dim = x.shape
    hidden = w1.shape[1]
    n_out = w2.shape[1]                      # already lane-dense (multiple of 128)
    out_dtype = x.dtype

    # --- choose block_batch: one big step per TensorCore (grid multiple of 2 on
    #     v7x, single step on v5e/v6e), capped for very large batches.
    if block_batch is None:
        num_tc = _num_tensorcores()
        block_batch = _round_up(pl.cdiv(batch, num_tc), _SUBLANE)
        block_batch = min(block_batch, _MAX_BLOCK_BATCH)

    padded_batch = _round_up(batch, block_batch)
    if padded_batch != batch:
        # Padded rows compute garbage that is sliced off below (wasted work only).
        x = jnp.pad(x, ((0, padded_batch - batch), (0, 0)))

    grid = (padded_batch // block_batch,)

    # --- VMEM budget: double-buffered pipeline blocks + headroom (v7x 64 MiB safe)
    blk_bytes = (
        block_batch * input_dim * 4      # x tile (f32; cast to bf16 in-kernel)
        + input_dim * hidden * 2         # w1 (bf16)
        + hidden * 4                     # b1 (f32)
        + hidden * n_out * 2             # w2 (bf16)
        + n_out * 4                      # b2 (f32)
        + block_batch * n_out * 4        # out tile (f32)
    )
    vmem_limit = int(min(max(2 * blk_bytes + (4 << 20), 16 << 20), 64 << 20))

    flops = 2 * padded_batch * (input_dim * hidden + hidden * n_out)
    bytes_accessed = (
        padded_batch * input_dim * 4 + input_dim * hidden * 2 + hidden * 4
        + hidden * n_out * 2 + n_out * 4 + padded_batch * n_out * 4
    )

    out = pl.pallas_call(
        _mlp_kernel,
        out_shape=jax.ShapeDtypeStruct((padded_batch, n_out), jnp.float32),
        grid=grid,
        in_specs=[
            pl.BlockSpec((block_batch, input_dim), lambda i: (i, 0)),
            pl.BlockSpec((input_dim, hidden), lambda i: (0, 0)),
            pl.BlockSpec((1, hidden), lambda i: (0, 0)),
            pl.BlockSpec((hidden, n_out), lambda i: (0, 0)),
            pl.BlockSpec((1, n_out), lambda i: (0, 0)),
        ],
        out_specs=pl.BlockSpec((block_batch, n_out), lambda i: (i, 0)),
        compiler_params=pltpu.CompilerParams(
            dimension_semantics=("parallel",),
            vmem_limit_bytes=vmem_limit,
        ),
        cost_estimate=pl.CostEstimate(
            flops=flops, transcendentals=0, bytes_accessed=bytes_accessed),
    )(x, w1, b1, w2, b2)

    # Only slice when padding was actually applied (avoids an extra pass otherwise).
    if padded_batch != batch or n_out != output_dim:
        out = out[:batch, :output_dim]
    if out.dtype != out_dtype:
        out = out.astype(out_dtype)
    return out


def init_params(key, input_dim, hidden, output_dim, dtype=jnp.float32):
    """Deterministic synthetic init (uniform, roughly PyTorch Linear scale)."""
    k1, k2, k3, k4 = jax.random.split(key, 4)
    lim1 = 1.0 / (input_dim ** 0.5)
    lim2 = 1.0 / (hidden ** 0.5)
    # Stored as [in_features, out_features] (transposed vs. PyTorch storage).
    w1 = jax.random.uniform(k1, (input_dim, hidden), dtype, -lim1, lim1)
    b1 = jax.random.uniform(k2, (1, hidden), dtype, -lim1, lim1)
    w2 = jax.random.uniform(k3, (hidden, output_dim), dtype, -lim2, lim2)
    b2 = jax.random.uniform(k4, (1, output_dim), dtype, -lim2, lim2)
    return w1, b1, w2, b2


if __name__ == "__main__":
    # Shapes consistent with the module: x is [batch, input_dim], hidden fixed at 512.
    batch, input_dim, hidden, output_dim = 256, 64, 512, 16

    key = jax.random.PRNGKey(0)
    kx, kp = jax.random.split(key)
    x = jax.random.normal(kx, (batch, input_dim), jnp.float32)
    w1, b1, w2, b2 = init_params(kp, input_dim, hidden, output_dim)

    # One-time conversion of the static params (bf16 weights, lane-dense padding).
    (kw1, kb1, kw2, kb2), odim = prepare_params(w1, b1, w2, b2)

    out = classifier_forward(x, kw1, kb1, kw2, kb2, output_dim=odim)
    out = jax.block_until_ready(out)

    # Pure-JAX reference with matching mixed precision (bf16 matmul inputs, f32 accum).
    h = jnp.maximum(
        jnp.dot(x.astype(jnp.bfloat16), w1.astype(jnp.bfloat16),
                preferred_element_type=jnp.float32) + b1, 0.0)
    ref = jnp.dot(h.astype(jnp.bfloat16), w2.astype(jnp.bfloat16),
                  preferred_element_type=jnp.float32) + b2

    assert out.shape == (batch, output_dim)
    assert jnp.allclose(out, ref, atol=1e-2, rtol=1e-2), float(jnp.max(jnp.abs(out - ref)))

    print("KERNEL_OK")
</pallas_src>

<mosaic_0001>
module attributes {stable_mosaic.version = 11 : i64} {
  func.func @_mlp_kernel(%arg0: i32, %arg1: memref<256x64xf32, #tpu.memory_space<vmem>>, %arg2: memref<64x512xbf16, #tpu.memory_space<vmem>>, %arg3: memref<1x512xf32, #tpu.memory_space<vmem>>, %arg4: memref<512x128xbf16, #tpu.memory_space<vmem>>, %arg5: memref<1x128xf32, #tpu.memory_space<vmem>>, %arg6: memref<256x128xf32, #tpu.memory_space<vmem>>) attributes {dimension_semantics = [#tpu.dimension_semantics<parallel>], iteration_bounds = array<i64: 1>, scalar_prefetch = 0 : i64, scratch_operands = 0 : i64, tpu.core_type = #tpu.core_type<tc>, window_params = [{transform_indices = @transform_0, window_bounds = array<i64: 256, 64>}, {pipeline_mode = #tpu.pipeline_mode<synchronous>, transform_indices = @transform_1, window_bounds = array<i64: 64, 512>}, {pipeline_mode = #tpu.pipeline_mode<synchronous>, transform_indices = @transform_2, window_bounds = array<i64: 1, 512>}, {pipeline_mode = #tpu.pipeline_mode<synchronous>, transform_indices = @transform_3, window_bounds = array<i64: 512, 128>}, {pipeline_mode = #tpu.pipeline_mode<synchronous>, transform_indices = @transform_4, window_bounds = array<i64: 1, 128>}, {transform_indices = @transform_5, window_bounds = array<i64: 256, 128>}]} {
    %c0 = arith.constant 0 : index
    %c0_0 = arith.constant 0 : index
    %0 = vector.load %arg1[%c0, %c0_0] : memref<256x64xf32, #tpu.memory_space<vmem>>, vector<256x64xf32>
    %1 = arith.truncf %0 : vector<256x64xf32> to vector<256x64xbf16>
    %c0_1 = arith.constant 0 : index
    %c0_2 = arith.constant 0 : index
    %2 = vector.load %arg2[%c0_1, %c0_2] : memref<64x512xbf16, #tpu.memory_space<vmem>>, vector<64x512xbf16>
    %cst = arith.constant dense<0.000000e+00> : vector<256x512xf32>
    %3 = tpu.matmul %1, %2, %cst {dimension_numbers = #tpu.dot_dimension_numbers<[1], [0], [0], [1], [0, 0, 1, 1], [], []>} : vector<256x64xbf16>, vector<64x512xbf16>, vector<256x512xf32> -> vector<256x512xf32>
    %c0_3 = arith.constant 0 : index
    %c0_4 = arith.constant 0 : index
    %4 = vector.load %arg3[%c0_3, %c0_4] : memref<1x512xf32, #tpu.memory_space<vmem>>, vector<1x512xf32>
    %5 = vector.broadcast %4 : vector<1x512xf32> to vector<256x512xf32>
    %6 = arith.addf %3, %5 : vector<256x512xf32>
    %cst_5 = arith.constant 0.000000e+00 : f32
    %7 = vector.broadcast %cst_5 : f32 to vector<256x512xf32>
    %8 = arith.maximumf %6, %7 : vector<256x512xf32>
    %9 = arith.truncf %8 : vector<256x512xf32> to vector<256x512xbf16>
    %c0_6 = arith.constant 0 : index
    %c0_7 = arith.constant 0 : index
    %10 = vector.load %arg4[%c0_6, %c0_7] : memref<512x128xbf16, #tpu.memory_space<vmem>>, vector<512x128xbf16>
    %cst_8 = arith.constant dense<0.000000e+00> : vector<256x128xf32>
    %11 = tpu.matmul %9, %10, %cst_8 {dimension_numbers = #tpu.dot_dimension_numbers<[1], [0], [0], [1], [0, 0, 1, 1], [], []>} : vector<256x512xbf16>, vector<512x128xbf16>, vector<256x128xf32> -> vector<256x128xf32>
    %c0_9 = arith.constant 0 : index
    %c0_10 = arith.constant 0 : index
    %12 = vector.load %arg5[%c0_9, %c0_10] : memref<1x128xf32, #tpu.memory_space<vmem>>, vector<1x128xf32>
    %13 = vector.broadcast %12 : vector<1x128xf32> to vector<256x128xf32>
    %14 = arith.addf %11, %13 : vector<256x128xf32>
    %c0_11 = arith.constant 0 : index
    %c0_12 = arith.constant 0 : index
    %15 = vector.load %arg6[%c0_11, %c0_12] : memref<256x128xf32, #tpu.memory_space<vmem>>, vector<256x128xf32>
    tpu.vector_store %arg6[%c0_11, %c0_12], %14 {strides = array<i32>} : memref<256x128xf32, #tpu.memory_space<vmem>>, vector<256x128xf32>,
    return
  }
  func.func @transform_0(%arg0: i32) -> (i32, i32) {
    %c0_i32 = arith.constant 0 : i32
    %c0_i32_0 = arith.constant 0 : i32
    return %arg0, %c0_i32 : i32, i32
  }
  func.func @transform_1(%arg0: i32) -> (i32, i32) {
    %c0_i32 = arith.constant 0 : i32
    %c0_i32_0 = arith.constant 0 : i32
    %c0_i32_1 = arith.constant 0 : i32
    return %c0_i32, %c0_i32_0 : i32, i32
  }
  func.func @transform_2(%arg0: i32) -> (i32, i32) {
    %c0_i32 = arith.constant 0 : i32
    %c0_i32_0 = arith.constant 0 : i32
    %c0_i32_1 = arith.constant 0 : i32
    return %c0_i32, %c0_i32_0 : i32, i32
  }
  func.func @transform_3(%arg0: i32) -> (i32, i32) {
    %c0_i32 = arith.constant 0 : i32
    %c0_i32_0 = arith.constant 0 : i32
    %c0_i32_1 = arith.constant 0 : i32
    return %c0_i32, %c0_i32_0 : i32, i32
  }
  func.func @transform_4(%arg0: i32) -> (i32, i32) {
    %c0_i32 = arith.constant 0 : i32
    %c0_i32_0 = arith.constant 0 : i32
    %c0_i32_1 = arith.constant 0 : i32
    return %c0_i32, %c0_i32_0 : i32, i32
  }
  func.func @transform_5(%arg0: i32) -> (i32, i32) {
    %c0_i32 = arith.constant 0 : i32
    %c0_i32_0 = arith.constant 0 : i32
    return %arg0, %c0_i32 : i32, i32
  }
}

</mosaic_0001>

<bundles_post_ra>
// kernel: classifier_forward.1
= control target key start
LH: loop header
LB: loop body
LE: loop exit
PB: predicated region body
PF: predicated region fallthrough
CT: control target
= control target key end

     0   :  { %v1797_v1 = vmov 0   ;;  %vm187_vm0 = vcmask 523264   ;;  %s2404_s1 = inlined_call_operand.vmem [shape: bf16[64,512], index: 1, kind: input, shape index: {}]   ;;  %s2405_s0 = inlined_call_operand.vmem [shape: f32[256,64], index: 0, kind: input, shape index: {}]   ;;  %s2406_s3 = inlined_call_operand.vmem [shape: bf16[512,128], index: 3, kind: input, shape index: {}]   ;;  %s2407_s2 = inlined_call_operand.vmem [shape: f32[1,512], index: 2, kind: input, shape index: {}]   ;;  %s2408_s4 = inlined_call_operand.vmem [shape: f32[1,128], index: 4, kind: input, shape index: {}]   ;;  %s2409_s5 = inlined_call_operand.vmem [shape: f32[256,128], index: 5, kind: output, shape index: {}]  }
   0x1   :  { %v1741_v0 = vld [vmem:[%s2404_s1 + $0x4] ss:$16 sps:$4 sm:$0xff]   ;;  %268 = vmatprep.mubr.bf16.mxu0 %v1797_v1  ;;  %461 = vmatprep.mubr.bf16.mxu1 %v1797_v1  ;;  %v1743_v2 = vld [vmem:[%s2404_s1 + $0xc] ss:$16 sps:$4 sm:$0xff]   ;;  %v1745_v3 = vld [vmem:[%s2404_s1] ss:$16 sps:$4 sm:$0xff]  }
   0x2   :  { %236 = vmatprep.subr.bf16.mxu0 %v1741_v0  ;;  %v1746_v4 = vld [vmem:[%s2404_s1 + $0x8] ss:$16 sps:$4 sm:$0xff]   ;;  %429 = vmatprep.subr.bf16.mxu1 %v1743_v2  ;;  %v1747_v5 = vld [vmem:[%s2404_s1 + $0x24] ss:$16 sps:$4 sm:$0xff]   ;;  %v1749_v6 = vld [vmem:[%s2404_s1 + $0x2c] ss:$16 sps:$4 sm:$0xff]  }
   0x3   :  { %237 = vmatpush1.bf16.msra.mxu0 %v1745_v3  ;;  %430 = vmatpush1.bf16.msra.mxu1 %v1746_v4  ;;  %v1751_v7 = vld [vmem:[%s2404_s1 + $0x20] ss:$16 sps:$4 sm:$0xff]   ;;  %v1752_v8 = vld [vmem:[%s2404_s1 + $0x28] ss:$16 sps:$4 sm:$0xff]   ;;  %v1753_v9 = vld [vmem:[%s2404_s1 + $0x44] ss:$16 sps:$4 sm:$0xff]  }
   0x4   :  { %238 = vmatprep.subr.bf16.mxu0 %v1747_v5  ;;  %431 = vmatprep.subr.bf16.mxu1 %v1749_v6  ;;  %v1755_v10 = vld [vmem:[%s2404_s1 + $0x4c] ss:$16 sps:$4 sm:$0xff]   ;;  %v1757_v11 = vld [vmem:[%s2404_s1 + $0x40] ss:$16 sps:$4 sm:$0xff]   ;;  %v1758_v12 = vld [vmem:[%s2404_s1 + $0x48] ss:$16 sps:$4 sm:$0xff]  }
   0x5   :  { %v1759_v13 = vld [vmem:[%s2404_s1 + $0x64] ss:$16 sps:$4 sm:$0xff]   ;;  %v1761_v14 = vld [vmem:[%s2404_s1 + $0x6c] ss:$16 sps:$4 sm:$0xff]   ;;  %v1763_v15 = vld [vmem:[%s2404_s1 + $0x60] ss:$16 sps:$4 sm:$0xff]  }
   0x6   :  { %v1764_v16 = vld [vmem:[%s2404_s1 + $0x68] ss:$16 sps:$4 sm:$0xff]   ;;  %v21_v17 = vld [vmem:[%s2405_s0] sm:$0xff]  ;;  %v23_v20 = vld [vmem:[%s2405_s0 + $0x10] sm:$0xff] }
   0x7   :  { %239 = vmatpush1.bf16.msra.mxu0 %v1751_v7  ;;  %432 = vmatpush1.bf16.msra.mxu1 %v1752_v8  ;;  %v22_v18 = vld [vmem:[%s2405_s0 + $0x8] sm:$0xff]  ;;  %v24_v21 = vld [vmem:[%s2405_s0 + $0x18] sm:$0xff]  ;;  %v1765_v22 = vld [vmem:[%s2406_s3 + $0x40] sm:$0xff]  }
   0x8   :  { %240 = vmatprep.subr.bf16.mxu0 %v1753_v9  ;;  %433 = vmatprep.subr.bf16.mxu1 %v1755_v10  ;;  %v53_v19 = vpack.c.bf16 %v22_v18, %v21_v17  ;;  %v1766_v23 = vld [vmem:[%s2406_s3] sm:$0xff]   ;;  %v54_v25 = vpack.c.bf16 %v24_v21, %v23_v20  ;;  %v1769_v27 = vld [vmem:[%s2406_s3 + $0x48] sm:$0xff]   ;;  %v1773_v33 = vld [vmem:[%s2406_s3 + $0x50] sm:$0xff]  }
   0x9   :  { %v1767_v24 = vld [vmem:[%s2406_s3 + $0xc0] sm:$0xff]   ;;  %v1770_v28 = vld [vmem:[%s2406_s3 + $0x8] sm:$0xff]   ;;  %v1774_v35 = vld [vmem:[%s2406_s3 + $0x10] sm:$0xff]  }
   0xa   :  { %v1768_v26 = vld [vmem:[%s2406_s3 + $0x80] sm:$0xff]   ;;  %v1771_v29 = vld [vmem:[%s2406_s3 + $0xc8] sm:$0xff]   ;;  %v1775_v36 = vld [vmem:[%s2406_s3 + $0xd0] sm:$0xff]  }
   0xb   :  { %241 = vmatpush1.bf16.msra.mxu0 %v1757_v11  ;;  %434 = vmatpush1.bf16.msra.mxu1 %v1758_v12  ;;  %v25_v30 = vld [vmem:[%s2405_s0 + $0x20] sm:$0xff]  ;;  %v26_v31 = vld [vmem:[%s2405_s0 + $0x28] sm:$0xff]  ;;  %v1776_v37 = vld [vmem:[%s2406_s3 + $0x90] sm:$0xff]  }
   0xc   :  { %242 = vmatprep.subr.bf16.mxu0 %v1759_v13  ;;  %435 = vmatprep.subr.bf16.mxu1 %v1761_v14  ;;  %v1772_v32 = vld [vmem:[%s2406_s3 + $0x88] sm:$0xff]   ;;  %v55_v34 = vpack.c.bf16 %v26_v31, %v25_v30  ;;  %v27_v38 = vld [vmem:[%s2405_s0 + $0x30] sm:$0xff]  ;;  %v28_v39 = vld [vmem:[%s2405_s0 + $0x38] sm:$0xff] }
   0xd   :  { %v1777_v40 = vld [vmem:[%s2406_s3 + $0x58] sm:$0xff]   ;;  %v1781_v44 = vld [vmem:[%s2406_s3 + $0x60] sm:$0xff]   ;;  %v56_v45 = vpack.c.bf16 %v28_v39, %v27_v38  ;;  %v30_v50 = vld [vmem:[%s2405_s0 + $0x48] sm:$0xff] }
   0xe   :  { %v1778_v41 = vld [vmem:[%s2406_s3 + $0x18] sm:$0xff]   ;;  %v1782_v46 = vld [vmem:[%s2406_s3 + $0x20] sm:$0xff]   ;;  %v1785_v51 = vld [vmem:[%s2406_s3 + $0x68] sm:$0xff]  }
   0xf   :  { %243 = vmatpush1.bf16.msra.mxu0 %v1763_v15  ;;  %436 = vmatpush1.bf16.msra.mxu1 %v1764_v16  ;;  %v1779_v42 = vld [vmem:[%s2406_s3 + $0xd8] sm:$0xff]   ;;  %v1783_v47 = vld [vmem:[%s2406_s3 + $0xe0] sm:$0xff]   ;;  %v1786_v52 = vld [vmem:[%s2406_s3 + $0x28] sm:$0xff]  }
  0x10   :  { %1516 = vmatprep.subr.bf16.mxu0 %v1765_v22  ;;  %1628 = vmatprep.subr.bf16.mxu1 %v1767_v24  ;;  %v1780_v43 = vld [vmem:[%s2406_s3 + $0x98] sm:$0xff]   ;;  %v1784_v48 = vld [vmem:[%s2406_s3 + $0xa0] sm:$0xff]   ;;  %v1787_v53 = vld [vmem:[%s2406_s3 + $0xe8] sm:$0xff]  }
  0x11   :  { %v29_v49 = vld [vmem:[%s2405_s0 + $0x40] sm:$0xff]  ;;  %v1788_v54 = vld [vmem:[%s2406_s3 + $0xa8] sm:$0xff]   ;;  %v1789_v55 = vld [vmem:[%s2406_s3 + $0x70] sm:$0xff]  }
  0x12   :  { %1451 = vmatmul.mubr.msk.bf16.vlgmr.msra.gmra.mrb[0].mxu0 %vm187_vm0, %v53_v19  ;;  %1467 = vmatmul.mubr.msk.bf16.vlgmr.msra.gmra.mrb[0].mxu1 %vm187_vm0, %v53_v19  ;;  %v57_v56 = vpack.c.bf16 %v30_v50, %v29_v49  ;;  %v1790_v57 = vld [vmem:[%s2406_s3 + $0x30] sm:$0xff]   ;;  %v32_v61 = vld [vmem:[%s2405_s0 + $0x58] sm:$0xff]  ;;  %v33_v4 = vld [vmem:[%s2405_s0 + $0x60] sm:$0xff] }
  0x13   :  { %278 = vmatprep.mubr.bf16.mxu0 %v1797_v1  ;;  %471 = vmatprep.mubr.bf16.mxu1 %v1797_v1  ;;  %v1791_v58 = vld [vmem:[%s2406_s3 + $0xf0] sm:$0xff]   ;;  %v1793_v62 = vld [vmem:[%s2406_s3 + $0x78] sm:$0xff]   ;;  %v34_v5 = vld [vmem:[%s2405_s0 + $0x68] sm:$0xff] }
  0x14   :  { %1517 = vmatpush3.bf16.msra.mxu0 %v1766_v23  ;;  %1629 = vmatpush3.bf16.msra.mxu1 %v1768_v26  ;;  %v1792_v59 = vld [vmem:[%s2406_s3 + $0xb0] sm:$0xff]   ;;  %v1794_v63 = vld [vmem:[%s2406_s3 + $0x38] sm:$0xff]   ;;  %v59_v6 = vpack.c.bf16 %v34_v5, %v33_v4  ;;  %v37_v10 = vld [vmem:[%s2405_s0 + $0x80] sm:$0xff] }
  0x15   :  { %1518 = vmatprep.subr.bf16.mxu0 %v1769_v27  ;;  %1630 = vmatprep.subr.bf16.mxu1 %v1771_v29  ;;  %v31_v60 = vld [vmem:[%s2405_s0 + $0x50] sm:$0xff]  ;;  %v1795_v0 = vld [vmem:[%s2406_s3 + $0xf8] sm:$0xff]   ;;  %v38_v11 = vld [vmem:[%s2405_s0 + $0x88] sm:$0xff] }
  0x16   :  { %v1796_v2 = vld [vmem:[%s2406_s3 + $0xb8] sm:$0xff]   ;;  %v58_v3 = vpack.c.bf16 %v32_v61, %v31_v60  ;;  %v35_v7 = vld [vmem:[%s2405_s0 + $0x70] sm:$0xff]  ;;  %v61_v12 = vpack.c.bf16 %v38_v11, %v37_v10  ;;  %v41_v16 = vld [vmem:[%s2405_s0 + $0xa0] sm:$0xff] }
  0x17   :  { %v36_v8 = vld [vmem:[%s2405_s0 + $0x78] sm:$0xff]  ;;  %v39_v13 = vld [vmem:[%s2405_s0 + $0x90] sm:$0xff]  ;;  %v42_v17 = vld [vmem:[%s2405_s0 + $0xa8] sm:$0xff] }
  0x18   :  { %1519 = vmatpush3.bf16.msra.mxu0 %v1770_v28  ;;  %1631 = vmatpush3.bf16.msra.mxu1 %v1772_v32  ;;  %v60_v9 = vpack.c.bf16 %v36_v8, %v35_v7  ;;  %v40_v14 = vld [vmem:[%s2405_s0 + $0x98] sm:$0xff]  ;;  %v63_v18 = vpack.c.bf16 %v42_v17, %v41_v16  ;;  %v43_v19 = vld [vmem:[%s2405_s0 + $0xb0] sm:$0xff]  ;;  %v45_v22 = vld [vmem:[%s2405_s0 + $0xc0] sm:$0xff] }
  0x19   :  { %1520 = vmatprep.subr.bf16.mxu0 %v1773_v33  ;;  %1632 = vmatprep.subr.bf16.mxu1 %v1775_v36  ;;  %v62_v15 = vpack.c.bf16 %v40_v14, %v39_v13  ;;  %v44_v20 = vld [vmem:[%s2405_s0 + $0xb8] sm:$0xff]  ;;  %v46_v23 = vld [vmem:[%s2405_s0 + $0xc8] sm:$0xff]  ;;  %v49_v28 = vld [vmem:[%s2405_s0 + $0xe0] sm:$0xff] }
  0x1a   :  { %1452 = vmatmul.mubr.msk.bf16.gmra.mrb[4].mxu0 %vm187_vm0, %v54_v25  ;;  %1468 = vmatmul.mubr.msk.bf16.gmra.mrb[4].mxu1 %vm187_vm0, %v54_v25  ;;  %v64_v21 = vpack.c.bf16 %v44_v20, %v43_v19  ;;  %v65_v24 = vpack.c.bf16 %v46_v23, %v45_v22  ;;  %v47_v25 = vld [vmem:[%s2405_s0 + $0xd0] sm:$0xff]  ;;  %v48_v26 = vld [vmem:[%s2405_s0 + $0xd8] sm:$0xff]  ;;  %v50_v29 = vld [vmem:[%s2405_s0 + $0xe8] sm:$0xff] }
  0x1b   :  { %288 = vmatprep.mubr.bf16.mxu0 %v1797_v1  ;;  %481 = vmatprep.mubr.bf16.mxu1 %v1797_v1  ;;  %v66_v27 = vpack.c.bf16 %v48_v26, %v47_v25  ;;  %v67_v30 = vpack.c.bf16 %v50_v29, %v49_v28  ;;  %v51_v31 = vld [vmem:[%s2405_s0 + $0xf0] sm:$0xff]  ;;  %v52_v32 = vld [vmem:[%s2405_s0 + $0xf8] sm:$0xff] }
  0x1c   :  { %1521 = vmatpush3.bf16.msra.mxu0 %v1774_v35  ;;  %1633 = vmatpush3.bf16.msra.mxu1 %v1776_v37  ;;  %v68_v33 = vpack.c.bf16 %v52_v32, %v51_v31 }
  0x1d   :  { %1522 = vmatprep.subr.bf16.mxu0 %v1777_v40  ;;  %1634 = vmatprep.subr.bf16.mxu1 %v1779_v42 }
  0x20   :  { %1523 = vmatpush3.bf16.msra.mxu0 %v1778_v41  ;;  %1635 = vmatpush3.bf16.msra.mxu1 %v1780_v43 }
  0x21   :  { %1524 = vmatprep.subr.bf16.mxu0 %v1781_v44  ;;  %1636 = vmatprep.subr.bf16.mxu1 %v1783_v47 }
  0x22   :  { %1453 = vmatmul.mubr.msk.bf16.gmra.mrb[8].mxu0 %vm187_vm0, %v55_v34  ;;  %1469 = vmatmul.mubr.msk.bf16.gmra.mrb[8].mxu1 %vm187_vm0, %v55_v34  ;;  %v87_v34 = vlaneseq }
  0x23   :  { %298 = vmatprep.mubr.bf16.mxu0 %v1797_v1  ;;  %491 = vmatprep.mubr.bf16.mxu1 %v1797_v1 }
  0x24   :  { %1525 = vmatpush3.bf16.msra.mxu0 %v1782_v46  ;;  %1637 = vmatpush3.bf16.msra.mxu1 %v1784_v48  ;;  %v88_v35 = vshrl.u32 %v87_v34, 7 }
  0x25   :  { %1526 = vmatprep.subr.bf16.mxu0 %v1785_v51  ;;  %1638 = vmatprep.subr.bf16.mxu1 %v1787_v53 }
  0x26   :  { %v89_v36 = vsub.s32 0, %v88_v35  ;;  %v97_v37 = vsub.s32 2, %v88_v35  ;;  %v93_v38 = vsub.s32 1, %v88_v35  ;;  %v101_v39 = vsub.s32 3, %v88_v35 }
  0x28   :  { %1527 = vmatpush3.bf16.msra.mxu0 %v1786_v52  ;;  %1639 = vmatpush3.bf16.msra.mxu1 %v1788_v54 }
  0x29   :  { %1528 = vmatprep.subr.bf16.mxu0 %v1789_v55  ;;  %1640 = vmatprep.subr.bf16.mxu1 %v1791_v58 }
  0x2a   :  { %1454 = vmatmul.mubr.msk.bf16.gmra.mrb[12].mxu0 %vm187_vm0, %v56_v45  ;;  %1470 = vmatmul.mubr.msk.bf16.gmra.mrb[12].mxu1 %vm187_vm0, %v56_v45 }
  0x2b   :  { %308 = vmatprep.mubr.bf16.mxu0 %v1797_v1  ;;  %501 = vmatprep.mubr.bf16.mxu1 %v1797_v1 }
  0x2c   :  { %1529 = vmatpush3.bf16.msra.mxu0 %v1790_v57  ;;  %1641 = vmatpush3.bf16.msra.mxu1 %v1792_v59 }
  0x2d   :  { %1530 = vmatprep.subr.bf16.mxu0 %v1793_v62  ;;  %1642 = vmatprep.subr.bf16.mxu1 %v1795_v0 }
  0x30   :  { %1531 = vmatpush3.bf16.msra.mxu0 %v1794_v63  ;;  %1643 = vmatpush3.bf16.msra.mxu1 %v1796_v2 }
  0x32   :  { %1455 = vmatmul.mubr.msk.bf16.gmra.mrb[16].mxu0 %vm187_vm0, %v57_v56  ;;  %1471 = vmatmul.mubr.msk.bf16.gmra.mrb[16].mxu1 %vm187_vm0, %v57_v56 }
  0x33   :  { %318 = vmatprep.mubr.bf16.mxu0 %v1797_v1  ;;  %511 = vmatprep.mubr.bf16.mxu1 %v1797_v1 }
  0x3a   :  { %1456 = vmatmul.mubr.msk.bf16.gmra.mrb[20].mxu0 %vm187_vm0, %v58_v3  ;;  %1472 = vmatmul.mubr.msk.bf16.gmra.mrb[20].mxu1 %vm187_vm0, %v58_v3 }
  0x3b   :  { %328 = vmatprep.mubr.bf16.mxu0 %v1797_v1  ;;  %521 = vmatprep.mubr.bf16.mxu1 %v1797_v1 }
  0x42   :  { %1457 = vmatmul.mubr.msk.bf16.gmra.mrb[24].mxu0 %vm187_vm0, %v59_v6  ;;  %1473 = vmatmul.mubr.msk.bf16.gmra.mrb[24].mxu1 %vm187_vm0, %v59_v6 }
  0x43   :  { %338 = vmatprep.mubr.bf16.mxu0 %v1797_v1  ;;  %531 = vmatprep.mubr.bf16.mxu1 %v1797_v1 }
  0x4a   :  { %1458 = vmatmul.mubr.msk.bf16.gmra.mrb[28].mxu0 %vm187_vm0, %v60_v9  ;;  %1474 = vmatmul.mubr.msk.bf16.gmra.mrb[28].mxu1 %vm187_vm0, %v60_v9 }
  0x4b   :  { %348 = vmatprep.mubr.bf16.mxu0 %v1797_v1  ;;  %541 = vmatprep.mubr.bf16.mxu1 %v1797_v1 }
  0x52   :  { %1459 = vmatmul.mubr.msk.bf16.gmra.mrb[32].mxu0 %vm187_vm0, %v61_v12  ;;  %1475 = vmatmul.mubr.msk.bf16.gmra.mrb[32].mxu1 %vm187_vm0, %v61_v12 }
  0x53   :  { %358 = vmatprep.mubr.bf16.mxu0 %v1797_v1  ;;  %551 = vmatprep.mubr.bf16.mxu1 %v1797_v1 }
  0x5a   :  { %1460 = vmatmul.mubr.msk.bf16.gmra.mrb[36].mxu0 %vm187_vm0, %v62_v15  ;;  %1476 = vmatmul.mubr.msk.bf16.gmra.mrb[36].mxu1 %vm187_vm0, %v62_v15 }
  0x5b   :  { %368 = vmatprep.mubr.bf16.mxu0 %v1797_v1  ;;  %561 = vmatprep.mubr.bf16.mxu1 %v1797_v1 }
  0x62   :  { %1461 = vmatmul.mubr.msk.bf16.gmra.mrb[40].mxu0 %vm187_vm0, %v63_v18  ;;  %1477 = vmatmul.mubr.msk.bf16.gmra.mrb[40].mxu1 %vm187_vm0, %v63_v18 }
  0x63   :  { %378 = vmatprep.mubr.bf16.mxu0 %v1797_v1  ;;  %571 = vmatprep.mubr.bf16.mxu1 %v1797_v1 }
  0x6a   :  { %1462 = vmatmul.mubr.msk.bf16.gmra.mrb[44].mxu0 %vm187_vm0, %v64_v21  ;;  %1478 = vmatmul.mubr.msk.bf16.gmra.mrb[44].mxu1 %vm187_vm0, %v64_v21 }
  0x6b   :  { %388 = vmatprep.mubr.bf16.mxu0 %v1797_v1  ;;  %581 = vmatprep.mubr.bf16.mxu1 %v1797_v1 }
  0x72   :  { %1463 = vmatmul.mubr.msk.bf16.gmra.mrb[48].mxu0 %vm187_vm0, %v65_v24  ;;  %1479 = vmatmul.mubr.msk.bf16.gmra.mrb[48].mxu1 %vm187_vm0, %v65_v24 }
  0x73   :  { %398 = vmatprep.mubr.bf16.mxu0 %v1797_v1  ;;  %591 = vmatprep.mubr.bf16.mxu1 %v1797_v1 }
  0x7a   :  { %1464 = vmatmul.mubr.msk.bf16.gmra.mrb[52].mxu0 %vm187_vm0, %v66_v27  ;;  %1480 = vmatmul.mubr.msk.bf16.gmra.mrb[52].mxu1 %vm187_vm0, %v66_v27 }
  0x7b   :  { %408 = vmatprep.mubr.bf16.mxu0 %v1797_v1  ;;  %601 = vmatprep.mubr.bf16.mxu1 %v1797_v1 }
  0x82   :  { %1465 = vmatmul.mubr.msk.bf16.gmra.mrb[56].mxu0 %vm187_vm0, %v67_v30  ;;  %1481 = vmatmul.mubr.msk.bf16.gmra.mrb[56].mxu1 %vm187_vm0, %v67_v30 }
  0x83   :  { %418 = vmatprep.mubr.bf16.mxu0 %v1797_v1  ;;  %611 = vmatprep.mubr.bf16.mxu1 %v1797_v1  ;;  %v85_v1 = vld [vmem:[%s2407_s2] sm:$0xf] }
  0x84   :  { %v2135_v40 = vrot.slane %v85_v1, %v89_v36  ;;  %v2137_v41 = vrot.slane %v85_v1, %v97_v37  ;;  %v2139_v42 = vrot.slane %v85_v1, %v93_v38  ;;  %v2141_v43 = vrot.slane %v85_v1, %v101_v39 }
  0x8a   :  { %1466 = vmatmul.mubr.msk.bf16.gmra.mrb[60].mxu0 %vm187_vm0, %v68_v33  ;;  %1482 = vmatmul.mubr.msk.bf16.gmra.mrb[60].mxu1 %vm187_vm0, %v68_v33 }
  0xe5   :  { %v270_v44 = vpop.f32.mrb[0].mxu0  ;;  %v463_v45 = vpop.f32.mrb[0].mxu1 }
  0xe6   :  { %v271_v46 = vadd.f32 %v270_v44, %v2135_v40  ;;  %v464_v47 = vadd.f32 %v463_v45, %v2137_v41  ;;  %v272_v48 = vpop.f32.mrb[1].mxu0  ;;  %v465_v49 = vpop.f32.mrb[1].mxu1 }
  0xe7   :  { %v273_v50 = vadd.f32 %v272_v48, %v2139_v42  ;;  %v466_v51 = vadd.f32 %v465_v49, %v2141_v43  ;;  %v274_v52 = vpop.f32.mrb[2].mxu0  ;;  %v467_v53 = vpop.f32.mrb[2].mxu1 }
  0xe8   :  { %v624_v54 = vmax.f32 %v464_v47, 0.0  ;;  %v275_v55 = vadd.f32 %v274_v52, %v2135_v40  ;;  %v468_v56 = vadd.f32 %v467_v53, %v2137_v41  ;;  %v276_v57 = vpop.f32.mrb[3].mxu0  ;;  %v469_v58 = vpop.f32.mrb[3].mxu1  ;;  %v622_v62 = vmax.f32 %v271_v46, 0.0 }
  0xe9   :  { %v625_v59 = vmax.f32 %v466_v51, 0.0  ;;  %v277_v60 = vadd.f32 %v276_v57, %v2139_v42  ;;  %v470_v61 = vadd.f32 %v469_v58, %v2141_v43  ;;  %v623_v2 = vmax.f32 %v273_v50, 0.0 }
  0xea   :  { %v626_v63 = vmax.f32 %v275_v55, 0.0  ;;  %v628_v0 = vmax.f32 %v468_v56, 0.0 }
  0xeb   :  { %v627_v3 = vmax.f32 %v277_v60, 0.0  ;;  %v629_v4 = vmax.f32 %v470_v61, 0.0 }
  0xec   :  { %v750_v5 = vpack.c.bf16 %v626_v63, %v622_v62  ;;  %v752_v6 = vpack.c.bf16 %v628_v0, %v624_v54 }
  0xed   :  { %v751_v7 = vpack.c.bf16 %v627_v3, %v623_v2  ;;  %v753_v8 = vpack.c.bf16 %v629_v4, %v625_v59  ;;  %v280_v9 = vpop.f32.mrb[4].mxu0  ;;  %v473_v10 = vpop.f32.mrb[4].mxu1 }
  0xee   :  { %v281_v11 = vadd.f32 %v280_v9, %v2135_v40  ;;  %v474_v12 = vadd.f32 %v473_v10, %v2137_v41  ;;  %v282_v13 = vpop.f32.mrb[5].mxu0  ;;  %v475_v14 = vpop.f32.mrb[5].mxu1 }
  0xef   :  { %v283_v15 = vadd.f32 %v282_v13, %v2139_v42  ;;  %v476_v16 = vadd.f32 %v475_v14, %v2141_v43  ;;  %v284_v17 = vpop.f32.mrb[6].mxu0  ;;  %v477_v18 = vpop.f32.mrb[6].mxu1  ;;  %1109 = vmatprep.mubr.bf16.mxu0 %v751_v7  ;;  %1270 = vmatprep.mubr.bf16.mxu1 %v753_v8 }
  0xf0   :  { %v632_v19 = vmax.f32 %v474_v12, 0.0  ;;  %v285_v20 = vadd.f32 %v284_v17, %v2135_v40  ;;  %v478_v21 = vadd.f32 %v477_v18, %v2137_v41  ;;  %v286_v22 = vpop.f32.mrb[7].mxu0  ;;  %v479_v23 = vpop.f32.mrb[7].mxu1  ;;  %1110 = vmatmul.mubr.bf16.vlgmr.msra.gmra.mrb[64].mxu0 %v750_v5  ;;  %1271 = vmatmul.mubr.bf16.vlgmr.msra.gmra.mrb[64].mxu1 %v752_v6  ;;  %v630_v27 = vmax.f32 %v281_v11, 0.0 }
  0xf1   :  { %v633_v24 = vmax.f32 %v476_v16, 0.0  ;;  %v287_v25 = vadd.f32 %v286_v22, %v2139_v42  ;;  %v480_v26 = vadd.f32 %v479_v23, %v2141_v43  ;;  %v631_v30 = vmax.f32 %v283_v15, 0.0 }
  0xf2   :  { %v634_v28 = vmax.f32 %v285_v20, 0.0  ;;  %v636_v29 = vmax.f32 %v478_v21, 0.0 }
  0xf3   :  { %v635_v31 = vmax.f32 %v287_v25, 0.0  ;;  %v637_v32 = vmax.f32 %v480_v26, 0.0 }
  0xf4   :  { %v754_v33 = vpack.c.bf16 %v634_v28, %v630_v27  ;;  %v756_v34 = vpack.c.bf16 %v636_v29, %v632_v19 }
  0xf5   :  { %v755_v35 = vpack.c.bf16 %v635_v31, %v631_v30  ;;  %v757_v36 = vpack.c.bf16 %v637_v32, %v633_v24  ;;  %v290_v37 = vpop.f32.mrb[8].mxu0  ;;  %v483_v1 = vpop.f32.mrb[8].mxu1 }
  0xf6   :  { %v291_v38 = vadd.f32 %v290_v37, %v2135_v40  ;;  %v484_v39 = vadd.f32 %v483_v1, %v2137_v41  ;;  %v292_v44 = vpop.f32.mrb[9].mxu0  ;;  %v485_v45 = vpop.f32.mrb[9].mxu1 }
  0xf7   :  { %v293_v46 = vadd.f32 %v292_v44, %v2139_v42  ;;  %v486_v47 = vadd.f32 %v485_v45, %v2141_v43  ;;  %v294_v48 = vpop.f32.mrb[10].mxu0  ;;  %v487_v49 = vpop.f32.mrb[10].mxu1  ;;  %1117 = vmatprep.mubr.bf16.mxu0 %v755_v35  ;;  %1278 = vmatprep.mubr.bf16.mxu1 %v757_v36 }
  0xf8   :  { %v640_v50 = vmax.f32 %v484_v39, 0.0  ;;  %v295_v51 = vadd.f32 %v294_v48, %v2135_v40  ;;  %v488_v52 = vadd.f32 %v487_v49, %v2137_v41  ;;  %v296_v53 = vpop.f32.mrb[11].mxu0  ;;  %v489_v54 = vpop.f32.mrb[11].mxu1  ;;  %1118 = vmatmul.mubr.bf16.gmra.mrb[68].mxu0 %v754_v33  ;;  %1279 = vmatmul.mubr.bf16.gmra.mrb[68].mxu1 %v756_v34  ;;  %v638_v58 = vmax.f32 %v291_v38, 0.0 }
  0xf9   :  { %v641_v55 = vmax.f32 %v486_v47, 0.0  ;;  %v297_v56 = vadd.f32 %v296_v53, %v2139_v42  ;;  %v490_v57 = vadd.f32 %v489_v54, %v2141_v43  ;;  %v639_v61 = vmax.f32 %v293_v46, 0.0 }
  0xfa   :  { %v642_v59 = vmax.f32 %v295_v51, 0.0  ;;  %v644_v60 = vmax.f32 %v488_v52, 0.0 }
  0xfb   :  { %v643_v62 = vmax.f32 %v297_v56, 0.0  ;;  %v645_v63 = vmax.f32 %v490_v57, 0.0 }
  0xfc   :  { %v758_v0 = vpack.c.bf16 %v642_v59, %v638_v58  ;;  %v760_v2 = vpack.c.bf16 %v644_v60, %v640_v50 }
  0xfd   :  { %v759_v3 = vpack.c.bf16 %v643_v62, %v639_v61  ;;  %v761_v4 = vpack.c.bf16 %v645_v63, %v641_v55  ;;  %v300_v5 = vpop.f32.mrb[12].mxu0  ;;  %v493_v6 = vpop.f32.mrb[12].mxu1 }
  0xfe   :  { %v301_v7 = vadd.f32 %v300_v5, %v2135_v40  ;;  %v494_v8 = vadd.f32 %v493_v6, %v2137_v41  ;;  %v302_v9 = vpop.f32.mrb[13].mxu0  ;;  %v495_v10 = vpop.f32.mrb[13].mxu1 }
  0xff   :  { %v303_v11 = vadd.f32 %v302_v9, %v2139_v42  ;;  %v496_v12 = vadd.f32 %v495_v10, %v2141_v43  ;;  %v304_v13 = vpop.f32.mrb[14].mxu0  ;;  %v497_v14 = vpop.f32.mrb[14].mxu1  ;;  %1125 = vmatprep.mubr.bf16.mxu0 %v759_v3  ;;  %1286 = vmatprep.mubr.bf16.mxu1 %v761_v4 }
 0x100   :  { %v648_v15 = vmax.f32 %v494_v8, 0.0  ;;  %v305_v16 = vadd.f32 %v304_v13, %v2135_v40  ;;  %v498_v17 = vadd.f32 %v497_v14, %v2137_v41  ;;  %v306_v18 = vpop.f32.mrb[15].mxu0  ;;  %v499_v19 = vpop.f32.mrb[15].mxu1  ;;  %1126 = vmatmul.mubr.bf16.gmra.mrb[72].mxu0 %v758_v0  ;;  %1287 = vmatmul.mubr.bf16.gmra.mrb[72].mxu1 %v760_v2  ;;  %v646_v23 = vmax.f32 %v301_v7, 0.0 }
 0x101   :  { %v649_v20 = vmax.f32 %v496_v12, 0.0  ;;  %v307_v21 = vadd.f32 %v306_v18, %v2139_v42  ;;  %v500_v22 = vadd.f32 %v499_v19, %v2141_v43  ;;  %v647_v26 = vmax.f32 %v303_v11, 0.0 }
 0x102   :  { %v650_v24 = vmax.f32 %v305_v16, 0.0  ;;  %v652_v25 = vmax.f32 %v498_v17, 0.0 }
 0x103   :  { %v651_v27 = vmax.f32 %v307_v21, 0.0  ;;  %v653_v28 = vmax.f32 %v500_v22, 0.0 }
 0x104   :  { %v762_v29 = vpack.c.bf16 %v650_v24, %v646_v23  ;;  %v764_v30 = vpack.c.bf16 %v652_v25, %v648_v15 }
 0x105   :  { %v763_v31 = vpack.c.bf16 %v651_v27, %v647_v26  ;;  %v765_v32 = vpack.c.bf16 %v653_v28, %v649_v20  ;;  %v310_v33 = vpop.f32.mrb[16].mxu0  ;;  %v503_v34 = vpop.f32.mrb[16].mxu1 }
 0x106   :  { %v311_v35 = vadd.f32 %v310_v33, %v2135_v40  ;;  %v504_v36 = vadd.f32 %v503_v34, %v2137_v41  ;;  %v312_v37 = vpop.f32.mrb[17].mxu0  ;;  %v505_v1 = vpop.f32.mrb[17].mxu1 }
 0x107   :  { %v313_v38 = vadd.f32 %v312_v37, %v2139_v42  ;;  %v506_v39 = vadd.f32 %v505_v1, %v2141_v43  ;;  %v314_v44 = vpop.f32.mrb[18].mxu0  ;;  %v507_v45 = vpop.f32.mrb[18].mxu1  ;;  %1133 = vmatprep.mubr.bf16.mxu0 %v763_v31  ;;  %1294 = vmatprep.mubr.bf16.mxu1 %v765_v32 }
 0x108   :  { %v656_v46 = vmax.f32 %v504_v36, 0.0  ;;  %v315_v47 = vadd.f32 %v314_v44, %v2135_v40  ;;  %v508_v48 = vadd.f32 %v507_v45, %v2137_v41  ;;  %v316_v49 = vpop.f32.mrb[19].mxu0  ;;  %v509_v50 = vpop.f32.mrb[19].mxu1  ;;  %1134 = vmatmul.mubr.bf16.gmra.mrb[76].mxu0 %v762_v29  ;;  %1295 = vmatmul.mubr.bf16.gmra.mrb[76].mxu1 %v764_v30  ;;  %v654_v54 = vmax.f32 %v311_v35, 0.0 }
 0x109   :  { %v657_v51 = vmax.f32 %v506_v39, 0.0  ;;  %v317_v52 = vadd.f32 %v316_v49, %v2139_v42  ;;  %v510_v53 = vadd.f32 %v509_v50, %v2141_v43  ;;  %v655_v57 = vmax.f32 %v313_v38, 0.0 }
 0x10a   :  { %v658_v55 = vmax.f32 %v315_v47, 0.0  ;;  %v660_v56 = vmax.f32 %v508_v48, 0.0 }
 0x10b   :  { %v659_v58 = vmax.f32 %v317_v52, 0.0  ;;  %v661_v59 = vmax.f32 %v510_v53, 0.0 }
 0x10c   :  { %v766_v60 = vpack.c.bf16 %v658_v55, %v654_v54  ;;  %v768_v61 = vpack.c.bf16 %v660_v56, %v656_v46 }
 0x10d   :  { %v767_v62 = vpack.c.bf16 %v659_v58, %v655_v57  ;;  %v769_v63 = vpack.c.bf16 %v661_v59, %v657_v51  ;;  %v320_v0 = vpop.f32.mrb[20].mxu0  ;;  %v513_v2 = vpop.f32.mrb[20].mxu1 }
 0x10e   :  { %v321_v3 = vadd.f32 %v320_v0, %v2135_v40  ;;  %v514_v4 = vadd.f32 %v513_v2, %v2137_v41  ;;  %v322_v5 = vpop.f32.mrb[21].mxu0  ;;  %v515_v6 = vpop.f32.mrb[21].mxu1 }
 0x10f   :  { %v323_v7 = vadd.f32 %v322_v5, %v2139_v42  ;;  %v516_v8 = vadd.f32 %v515_v6, %v2141_v43  ;;  %v324_v9 = vpop.f32.mrb[22].mxu0  ;;  %v517_v10 = vpop.f32.mrb[22].mxu1  ;;  %1141 = vmatprep.mubr.bf16.mxu0 %v767_v62  ;;  %1302 = vmatprep.mubr.bf16.mxu1 %v769_v63 }
 0x110   :  { %v664_v11 = vmax.f32 %v514_v4, 0.0  ;;  %v325_v12 = vadd.f32 %v324_v9, %v2135_v40  ;;  %v518_v13 = vadd.f32 %v517_v10, %v2137_v41  ;;  %v326_v14 = vpop.f32.mrb[23].mxu0  ;;  %v519_v15 = vpop.f32.mrb[23].mxu1  ;;  %1142 = vmatmul.mubr.bf16.gmra.mrb[80].mxu0 %v766_v60  ;;  %1303 = vmatmul.mubr.bf16.gmra.mrb[80].mxu1 %v768_v61  ;;  %v662_v19 = vmax.f32 %v321_v3, 0.0 }
 0x111   :  { %v665_v16 = vmax.f32 %v516_v8, 0.0  ;;  %v327_v17 = vadd.f32 %v326_v14, %v2139_v42  ;;  %v520_v18 = vadd.f32 %v519_v15, %v2141_v43  ;;  %v663_v22 = vmax.f32 %v323_v7, 0.0 }
 0x112   :  { %v666_v20 = vmax.f32 %v325_v12, 0.0  ;;  %v668_v21 = vmax.f32 %v518_v13, 0.0 }
 0x113   :  { %v667_v23 = vmax.f32 %v327_v17, 0.0  ;;  %v669_v24 = vmax.f32 %v520_v18, 0.0 }
 0x114   :  { %v770_v25 = vpack.c.bf16 %v666_v20, %v662_v19  ;;  %v772_v26 = vpack.c.bf16 %v668_v21, %v664_v11 }
 0x115   :  { %v771_v27 = vpack.c.bf16 %v667_v23, %v663_v22  ;;  %v773_v28 = vpack.c.bf16 %v669_v24, %v665_v16  ;;  %v330_v29 = vpop.f32.mrb[24].mxu0  ;;  %v523_v30 = vpop.f32.mrb[24].mxu1 }
 0x116   :  { %v331_v31 = vadd.f32 %v330_v29, %v2135_v40  ;;  %v524_v32 = vadd.f32 %v523_v30, %v2137_v41  ;;  %v332_v33 = vpop.f32.mrb[25].mxu0  ;;  %v525_v34 = vpop.f32.mrb[25].mxu1 }
 0x117   :  { %v333_v35 = vadd.f32 %v332_v33, %v2139_v42  ;;  %v526_v36 = vadd.f32 %v525_v34, %v2141_v43  ;;  %v334_v37 = vpop.f32.mrb[26].mxu0  ;;  %v527_v1 = vpop.f32.mrb[26].mxu1  ;;  %1149 = vmatprep.mubr.bf16.mxu0 %v771_v27  ;;  %1310 = vmatprep.mubr.bf16.mxu1 %v773_v28 }
 0x118   :  { %v672_v38 = vmax.f32 %v524_v32, 0.0  ;;  %v335_v39 = vadd.f32 %v334_v37, %v2135_v40  ;;  %v528_v44 = vadd.f32 %v527_v1, %v2137_v41  ;;  %v336_v45 = vpop.f32.mrb[27].mxu0  ;;  %v529_v46 = vpop.f32.mrb[27].mxu1  ;;  %1150 = vmatmul.mubr.bf16.gmra.mrb[84].mxu0 %v770_v25  ;;  %1311 = vmatmul.mubr.bf16.gmra.mrb[84].mxu1 %v772_v26  ;;  %v670_v50 = vmax.f32 %v331_v31, 0.0 }
 0x119   :  { %v673_v47 = vmax.f32 %v526_v36, 0.0  ;;  %v337_v48 = vadd.f32 %v336_v45, %v2139_v42  ;;  %v530_v49 = vadd.f32 %v529_v46, %v2141_v43  ;;  %v671_v53 = vmax.f32 %v333_v35, 0.0 }
 0x11a   :  { %v674_v51 = vmax.f32 %v335_v39, 0.0  ;;  %v676_v52 = vmax.f32 %v528_v44, 0.0 }
 0x11b   :  { %v675_v54 = vmax.f32 %v337_v48, 0.0  ;;  %v677_v55 = vmax.f32 %v530_v49, 0.0 }
 0x11c   :  { %v774_v56 = vpack.c.bf16 %v674_v51, %v670_v50  ;;  %v776_v57 = vpack.c.bf16 %v676_v52, %v672_v38 }
 0x11d   :  { %v775_v58 = vpack.c.bf16 %v675_v54, %v671_v53  ;;  %v777_v59 = vpack.c.bf16 %v677_v55, %v673_v47  ;;  %v340_v60 = vpop.f32.mrb[28].mxu0  ;;  %v533_v61 = vpop.f32.mrb[28].mxu1 }
 0x11e   :  { %v341_v62 = vadd.f32 %v340_v60, %v2135_v40  ;;  %v534_v63 = vadd.f32 %v533_v61, %v2137_v41  ;;  %v342_v0 = vpop.f32.mrb[29].mxu0  ;;  %v535_v2 = vpop.f32.mrb[29].mxu1 }
 0x11f   :  { %v343_v3 = vadd.f32 %v342_v0, %v2139_v42  ;;  %v536_v4 = vadd.f32 %v535_v2, %v2141_v43  ;;  %v344_v5 = vpop.f32.mrb[30].mxu0  ;;  %v537_v6 = vpop.f32.mrb[30].mxu1  ;;  %1157 = vmatprep.mubr.bf16.mxu0 %v775_v58  ;;  %1318 = vmatprep.mubr.bf16.mxu1 %v777_v59 }
 0x120   :  { %v680_v7 = vmax.f32 %v534_v63, 0.0  ;;  %v345_v8 = vadd.f32 %v344_v5, %v2135_v40  ;;  %v538_v9 = vadd.f32 %v537_v6, %v2137_v41  ;;  %v346_v10 = vpop.f32.mrb[31].mxu0  ;;  %v539_v11 = vpop.f32.mrb[31].mxu1  ;;  %1158 = vmatmul.mubr.bf16.gmra.mrb[88].mxu0 %v774_v56  ;;  %1319 = vmatmul.mubr.bf16.gmra.mrb[88].mxu1 %v776_v57  ;;  %v678_v15 = vmax.f32 %v341_v62, 0.0 }
 0x121   :  { %v681_v12 = vmax.f32 %v536_v4, 0.0  ;;  %v347_v13 = vadd.f32 %v346_v10, %v2139_v42  ;;  %v540_v14 = vadd.f32 %v539_v11, %v2141_v43  ;;  %v679_v18 = vmax.f32 %v343_v3, 0.0 }
 0x122   :  { %v682_v16 = vmax.f32 %v345_v8, 0.0  ;;  %v684_v17 = vmax.f32 %v538_v9, 0.0 }
 0x123   :  { %v683_v19 = vmax.f32 %v347_v13, 0.0  ;;  %v685_v20 = vmax.f32 %v540_v14, 0.0 }
 0x124   :  { %v778_v21 = vpack.c.bf16 %v682_v16, %v678_v15  ;;  %v780_v22 = vpack.c.bf16 %v684_v17, %v680_v7 }
 0x125   :  { %v779_v23 = vpack.c.bf16 %v683_v19, %v679_v18  ;;  %v781_v24 = vpack.c.bf16 %v685_v20, %v681_v12  ;;  %v350_v25 = vpop.f32.mrb[32].mxu0  ;;  %v543_v26 = vpop.f32.mrb[32].mxu1 }
 0x126   :  { %v351_v27 = vadd.f32 %v350_v25, %v2135_v40  ;;  %v544_v28 = vadd.f32 %v543_v26, %v2137_v41  ;;  %v352_v29 = vpop.f32.mrb[33].mxu0  ;;  %v545_v30 = vpop.f32.mrb[33].mxu1 }
 0x127   :  { %v353_v31 = vadd.f32 %v352_v29, %v2139_v42  ;;  %v546_v32 = vadd.f32 %v545_v30, %v2141_v43  ;;  %v354_v33 = vpop.f32.mrb[34].mxu0  ;;  %v547_v34 = vpop.f32.mrb[34].mxu1  ;;  %1165 = vmatprep.mubr.bf16.mxu0 %v779_v23  ;;  %1326 = vmatprep.mubr.bf16.mxu1 %v781_v24 }
 0x128   :  { %v688_v35 = vmax.f32 %v544_v28, 0.0  ;;  %v355_v36 = vadd.f32 %v354_v33, %v2135_v40  ;;  %v548_v37 = vadd.f32 %v547_v34, %v2137_v41  ;;  %v356_v1 = vpop.f32.mrb[35].mxu0  ;;  %v549_v38 = vpop.f32.mrb[35].mxu1  ;;  %1166 = vmatmul.mubr.bf16.gmra.mrb[92].mxu0 %v778_v21  ;;  %1327 = vmatmul.mubr.bf16.gmra.mrb[92].mxu1 %v780_v22  ;;  %v686_v46 = vmax.f32 %v351_v27, 0.0 }
 0x129   :  { %v689_v39 = vmax.f32 %v546_v32, 0.0  ;;  %v357_v44 = vadd.f32 %v356_v1, %v2139_v42  ;;  %v550_v45 = vadd.f32 %v549_v38, %v2141_v43  ;;  %v687_v49 = vmax.f32 %v353_v31, 0.0 }
 0x12a   :  { %v690_v47 = vmax.f32 %v355_v36, 0.0  ;;  %v692_v48 = vmax.f32 %v548_v37, 0.0 }
 0x12b   :  { %v691_v50 = vmax.f32 %v357_v44, 0.0  ;;  %v693_v51 = vmax.f32 %v550_v45, 0.0 }
 0x12c   :  { %v782_v52 = vpack.c.bf16 %v690_v47, %v686_v46  ;;  %v784_v53 = vpack.c.bf16 %v692_v48, %v688_v35 }
 0x12d   :  { %v783_v54 = vpack.c.bf16 %v691_v50, %v687_v49  ;;  %v785_v55 = vpack.c.bf16 %v693_v51, %v689_v39  ;;  %v360_v56 = vpop.f32.mrb[36].mxu0  ;;  %v553_v57 = vpop.f32.mrb[36].mxu1 }
 0x12e   :  { %v361_v58 = vadd.f32 %v360_v56, %v2135_v40  ;;  %v554_v59 = vadd.f32 %v553_v57, %v2137_v41  ;;  %v362_v60 = vpop.f32.mrb[37].mxu0  ;;  %v555_v61 = vpop.f32.mrb[37].mxu1 }
 0x12f   :  { %v363_v62 = vadd.f32 %v362_v60, %v2139_v42  ;;  %v556_v63 = vadd.f32 %v555_v61, %v2141_v43  ;;  %v364_v0 = vpop.f32.mrb[38].mxu0  ;;  %v557_v2 = vpop.f32.mrb[38].mxu1  ;;  %1173 = vmatprep.mubr.bf16.mxu0 %v783_v54  ;;  %1334 = vmatprep.mubr.bf16.mxu1 %v785_v55 }
 0x130   :  { %v696_v3 = vmax.f32 %v554_v59, 0.0  ;;  %v365_v4 = vadd.f32 %v364_v0, %v2135_v40  ;;  %v558_v5 = vadd.f32 %v557_v2, %v2137_v41  ;;  %v366_v6 = vpop.f32.mrb[39].mxu0  ;;  %v559_v7 = vpop.f32.mrb[39].mxu1  ;;  %1174 = vmatmul.mubr.bf16.gmra.mrb[96].mxu0 %v782_v52  ;;  %1335 = vmatmul.mubr.bf16.gmra.mrb[96].mxu1 %v784_v53  ;;  %v694_v11 = vmax.f32 %v361_v58, 0.0 }
 0x131   :  { %v697_v8 = vmax.f32 %v556_v63, 0.0  ;;  %v367_v9 = vadd.f32 %v366_v6, %v2139_v42  ;;  %v560_v10 = vadd.f32 %v559_v7, %v2141_v43  ;;  %v695_v14 = vmax.f32 %v363_v62, 0.0 }
 0x132   :  { %v698_v12 = vmax.f32 %v365_v4, 0.0  ;;  %v700_v13 = vmax.f32 %v558_v5, 0.0 }
 0x133   :  { %v699_v15 = vmax.f32 %v367_v9, 0.0  ;;  %v701_v16 = vmax.f32 %v560_v10, 0.0 }
 0x134   :  { %v786_v17 = vpack.c.bf16 %v698_v12, %v694_v11  ;;  %v788_v18 = vpack.c.bf16 %v700_v13, %v696_v3 }
 0x135   :  { %v787_v19 = vpack.c.bf16 %v699_v15, %v695_v14  ;;  %v789_v20 = vpack.c.bf16 %v701_v16, %v697_v8  ;;  %v370_v21 = vpop.f32.mrb[40].mxu0  ;;  %v563_v22 = vpop.f32.mrb[40].mxu1 }
 0x136   :  { %v371_v23 = vadd.f32 %v370_v21, %v2135_v40  ;;  %v564_v24 = vadd.f32 %v563_v22, %v2137_v41  ;;  %v372_v25 = vpop.f32.mrb[41].mxu0  ;;  %v565_v26 = vpop.f32.mrb[41].mxu1 }
 0x137   :  { %v373_v27 = vadd.f32 %v372_v25, %v2139_v42  ;;  %v566_v28 = vadd.f32 %v565_v26, %v2141_v43  ;;  %v374_v29 = vpop.f32.mrb[42].mxu0  ;;  %v567_v30 = vpop.f32.mrb[42].mxu1  ;;  %1181 = vmatprep.mubr.bf16.mxu0 %v787_v19  ;;  %1342 = vmatprep.mubr.bf16.mxu1 %v789_v20 }
 0x138   :  { %v704_v31 = vmax.f32 %v564_v24, 0.0  ;;  %v375_v32 = vadd.f32 %v374_v29, %v2135_v40  ;;  %v568_v33 = vadd.f32 %v567_v30, %v2137_v41  ;;  %v376_v34 = vpop.f32.mrb[43].mxu0  ;;  %v569_v35 = vpop.f32.mrb[43].mxu1  ;;  %1182 = vmatmul.mubr.bf16.gmra.mrb[100].mxu0 %v786_v17  ;;  %1343 = vmatmul.mubr.bf16.gmra.mrb[100].mxu1 %v788_v18  ;;  %v702_v38 = vmax.f32 %v371_v23, 0.0 }
 0x139   :  { %v705_v36 = vmax.f32 %v566_v28, 0.0  ;;  %v377_v37 = vadd.f32 %v376_v34, %v2139_v42  ;;  %v570_v1 = vadd.f32 %v569_v35, %v2141_v43  ;;  %v703_v45 = vmax.f32 %v373_v27, 0.0 }
 0x13a   :  { %v706_v39 = vmax.f32 %v375_v32, 0.0  ;;  %v708_v44 = vmax.f32 %v568_v33, 0.0 }
 0x13b   :  { %v707_v46 = vmax.f32 %v377_v37, 0.0  ;;  %v709_v47 = vmax.f32 %v570_v1, 0.0 }
 0x13c   :  { %v790_v48 = vpack.c.bf16 %v706_v39, %v702_v38  ;;  %v792_v49 = vpack.c.bf16 %v708_v44, %v704_v31 }
 0x13d   :  { %v791_v50 = vpack.c.bf16 %v707_v46, %v703_v45  ;;  %v793_v51 = vpack.c.bf16 %v709_v47, %v705_v36  ;;  %v380_v52 = vpop.f32.mrb[44].mxu0  ;;  %v573_v53 = vpop.f32.mrb[44].mxu1 }
 0x13e   :  { %v381_v54 = vadd.f32 %v380_v52, %v2135_v40  ;;  %v574_v55 = vadd.f32 %v573_v53, %v2137_v41  ;;  %v382_v56 = vpop.f32.mrb[45].mxu0  ;;  %v575_v57 = vpop.f32.mrb[45].mxu1 }
 0x13f   :  { %v383_v58 = vadd.f32 %v382_v56, %v2139_v42  ;;  %v576_v59 = vadd.f32 %v575_v57, %v2141_v43  ;;  %v384_v60 = vpop.f32.mrb[46].mxu0  ;;  %v577_v61 = vpop.f32.mrb[46].mxu1  ;;  %1189 = vmatprep.mubr.bf16.mxu0 %v791_v50  ;;  %1350 = vmatprep.mubr.bf16.mxu1 %v793_v51 }
 0x140   :  { %v712_v62 = vmax.f32 %v574_v55, 0.0  ;;  %v385_v63 = vadd.f32 %v384_v60, %v2135_v40  ;;  %v578_v0 = vadd.f32 %v577_v61, %v2137_v41  ;;  %v386_v2 = vpop.f32.mrb[47].mxu0  ;;  %v579_v3 = vpop.f32.mrb[47].mxu1  ;;  %1190 = vmatmul.mubr.bf16.gmra.mrb[104].mxu0 %v790_v48  ;;  %1351 = vmatmul.mubr.bf16.gmra.mrb[104].mxu1 %v792_v49  ;;  %v710_v7 = vmax.f32 %v381_v54, 0.0 }
 0x141   :  { %v713_v4 = vmax.f32 %v576_v59, 0.0  ;;  %v387_v5 = vadd.f32 %v386_v2, %v2139_v42  ;;  %v580_v6 = vadd.f32 %v579_v3, %v2141_v43  ;;  %v711_v10 = vmax.f32 %v383_v58, 0.0 }
 0x142   :  { %v714_v8 = vmax.f32 %v385_v63, 0.0  ;;  %v716_v9 = vmax.f32 %v578_v0, 0.0 }
 0x143   :  { %v715_v11 = vmax.f32 %v387_v5, 0.0  ;;  %v717_v12 = vmax.f32 %v580_v6, 0.0 }
 0x144   :  { %v794_v13 = vpack.c.bf16 %v714_v8, %v710_v7  ;;  %v796_v14 = vpack.c.bf16 %v716_v9, %v712_v62 }
 0x145   :  { %v795_v15 = vpack.c.bf16 %v715_v11, %v711_v10  ;;  %v797_v16 = vpack.c.bf16 %v717_v12, %v713_v4  ;;  %v390_v17 = vpop.f32.mrb[48].mxu0  ;;  %v583_v18 = vpop.f32.mrb[48].mxu1 }
 0x146   :  { %v391_v19 = vadd.f32 %v390_v17, %v2135_v40  ;;  %v584_v20 = vadd.f32 %v583_v18, %v2137_v41  ;;  %v392_v21 = vpop.f32.mrb[49].mxu0  ;;  %v585_v22 = vpop.f32.mrb[49].mxu1 }
 0x147   :  { %v393_v23 = vadd.f32 %v392_v21, %v2139_v42  ;;  %v586_v24 = vadd.f32 %v585_v22, %v2141_v43  ;;  %v394_v25 = vpop.f32.mrb[50].mxu0  ;;  %v587_v26 = vpop.f32.mrb[50].mxu1  ;;  %1197 = vmatprep.mubr.bf16.mxu0 %v795_v15  ;;  %1358 = vmatprep.mubr.bf16.mxu1 %v797_v16 }
 0x148   :  { %v720_v27 = vmax.f32 %v584_v20, 0.0  ;;  %v395_v28 = vadd.f32 %v394_v25, %v2135_v40  ;;  %v588_v29 = vadd.f32 %v587_v26, %v2137_v41  ;;  %v396_v30 = vpop.f32.mrb[51].mxu0  ;;  %v589_v31 = vpop.f32.mrb[51].mxu1  ;;  %1198 = vmatmul.mubr.bf16.gmra.mrb[108].mxu0 %v794_v13  ;;  %1359 = vmatmul.mubr.bf16.gmra.mrb[108].mxu1 %v796_v14  ;;  %v718_v35 = vmax.f32 %v391_v19, 0.0 }
 0x149   :  { %v721_v32 = vmax.f32 %v586_v24, 0.0  ;;  %v397_v33 = vadd.f32 %v396_v30, %v2139_v42  ;;  %v590_v34 = vadd.f32 %v589_v31, %v2141_v43  ;;  %v719_v1 = vmax.f32 %v393_v23, 0.0 }
 0x14a   :  { %v722_v36 = vmax.f32 %v395_v28, 0.0  ;;  %v724_v37 = vmax.f32 %v588_v29, 0.0 }
 0x14b   :  { %v723_v38 = vmax.f32 %v397_v33, 0.0  ;;  %v725_v39 = vmax.f32 %v590_v34, 0.0 }
 0x14c   :  { %v798_v44 = vpack.c.bf16 %v722_v36, %v718_v35  ;;  %v800_v45 = vpack.c.bf16 %v724_v37, %v720_v27 }
 0x14d   :  { %v799_v46 = vpack.c.bf16 %v723_v38, %v719_v1  ;;  %v801_v47 = vpack.c.bf16 %v725_v39, %v721_v32  ;;  %v400_v48 = vpop.f32.mrb[52].mxu0  ;;  %v593_v49 = vpop.f32.mrb[52].mxu1 }
 0x14e   :  { %v401_v50 = vadd.f32 %v400_v48, %v2135_v40  ;;  %v594_v51 = vadd.f32 %v593_v49, %v2137_v41  ;;  %v402_v52 = vpop.f32.mrb[53].mxu0  ;;  %v595_v53 = vpop.f32.mrb[53].mxu1 }
 0x14f   :  { %v403_v54 = vadd.f32 %v402_v52, %v2139_v42  ;;  %v596_v55 = vadd.f32 %v595_v53, %v2141_v43  ;;  %v404_v56 = vpop.f32.mrb[54].mxu0  ;;  %v597_v57 = vpop.f32.mrb[54].mxu1  ;;  %1205 = vmatprep.mubr.bf16.mxu0 %v799_v46  ;;  %1366 = vmatprep.mubr.bf16.mxu1 %v801_v47 }
 0x150   :  { %v728_v58 = vmax.f32 %v594_v51, 0.0  ;;  %v405_v59 = vadd.f32 %v404_v56, %v2135_v40  ;;  %v598_v60 = vadd.f32 %v597_v57, %v2137_v41  ;;  %v406_v61 = vpop.f32.mrb[55].mxu0  ;;  %v599_v62 = vpop.f32.mrb[55].mxu1  ;;  %1206 = vmatmul.mubr.bf16.gmra.mrb[112].mxu0 %v798_v44  ;;  %1367 = vmatmul.mubr.bf16.gmra.mrb[112].mxu1 %v800_v45  ;;  %v726_v3 = vmax.f32 %v401_v50, 0.0 }
 0x151   :  { %v729_v63 = vmax.f32 %v596_v55, 0.0  ;;  %v407_v0 = vadd.f32 %v406_v61, %v2139_v42  ;;  %v600_v2 = vadd.f32 %v599_v62, %v2141_v43  ;;  %v727_v6 = vmax.f32 %v403_v54, 0.0 }
 0x152   :  { %v730_v4 = vmax.f32 %v405_v59, 0.0  ;;  %v732_v5 = vmax.f32 %v598_v60, 0.0 }
 0x153   :  { %v731_v7 = vmax.f32 %v407_v0, 0.0  ;;  %v733_v8 = vmax.f32 %v600_v2, 0.0 }
 0x154   :  { %v802_v9 = vpack.c.bf16 %v730_v4, %v726_v3  ;;  %v804_v10 = vpack.c.bf16 %v732_v5, %v728_v58 }
 0x155   :  { %v803_v11 = vpack.c.bf16 %v731_v7, %v727_v6  ;;  %v805_v12 = vpack.c.bf16 %v733_v8, %v729_v63  ;;  %v410_v13 = vpop.f32.mrb[56].mxu0  ;;  %v603_v14 = vpop.f32.mrb[56].mxu1 }
 0x156   :  { %v411_v15 = vadd.f32 %v410_v13, %v2135_v40  ;;  %v604_v16 = vadd.f32 %v603_v14, %v2137_v41  ;;  %v412_v17 = vpop.f32.mrb[57].mxu0  ;;  %v605_v18 = vpop.f32.mrb[57].mxu1 }
 0x157   :  { %v413_v19 = vadd.f32 %v412_v17, %v2139_v42  ;;  %v606_v20 = vadd.f32 %v605_v18, %v2141_v43  ;;  %v414_v21 = vpop.f32.mrb[58].mxu0  ;;  %v607_v22 = vpop.f32.mrb[58].mxu1  ;;  %1213 = vmatprep.mubr.bf16.mxu0 %v803_v11  ;;  %1374 = vmatprep.mubr.bf16.mxu1 %v805_v12 }
 0x158   :  { %v736_v23 = vmax.f32 %v604_v16, 0.0  ;;  %v415_v24 = vadd.f32 %v414_v21, %v2135_v40  ;;  %v608_v25 = vadd.f32 %v607_v22, %v2137_v41  ;;  %v416_v26 = vpop.f32.mrb[59].mxu0  ;;  %v609_v27 = vpop.f32.mrb[59].mxu1  ;;  %1214 = vmatmul.mubr.bf16.gmra.mrb[116].mxu0 %v802_v9  ;;  %1375 = vmatmul.mubr.bf16.gmra.mrb[116].mxu1 %v804_v10  ;;  %v734_v31 = vmax.f32 %v411_v15, 0.0 }
 0x159   :  { %v737_v28 = vmax.f32 %v606_v20, 0.0  ;;  %v417_v29 = vadd.f32 %v416_v26, %v2139_v42  ;;  %v610_v30 = vadd.f32 %v609_v27, %v2141_v43  ;;  %v735_v34 = vmax.f32 %v413_v19, 0.0 }
 0x15a   :  { %v738_v32 = vmax.f32 %v415_v24, 0.0  ;;  %v740_v33 = vmax.f32 %v608_v25, 0.0 }
 0x15b   :  { %v739_v35 = vmax.f32 %v417_v29, 0.0  ;;  %v741_v36 = vmax.f32 %v610_v30, 0.0 }
 0x15c   :  { %v806_v37 = vpack.c.bf16 %v738_v32, %v734_v31  ;;  %v808_v1 = vpack.c.bf16 %v740_v33, %v736_v23 }
 0x15d   :  { %v807_v38 = vpack.c.bf16 %v739_v35, %v735_v34  ;;  %v809_v39 = vpack.c.bf16 %v741_v36, %v737_v28  ;;  %v420_v44 = vpop.f32.mrb[60].mxu0  ;;  %v613_v45 = vpop.f32.mrb[60].mxu1 }
 0x15e   :  { %v421_v46 = vadd.f32 %v420_v44, %v2135_v40  ;;  %v614_v47 = vadd.f32 %v613_v45, %v2137_v41  ;;  %v422_v48 = vpop.f32.mrb[61].mxu0  ;;  %v615_v49 = vpop.f32.mrb[61].mxu1 }
 0x15f   :  { %v423_v50 = vadd.f32 %v422_v48, %v2139_v42  ;;  %v616_v51 = vadd.f32 %v615_v49, %v2141_v43  ;;  %v424_v52 = vpop.f32.mrb[62].mxu0  ;;  %v617_v53 = vpop.f32.mrb[62].mxu1  ;;  %1221 = vmatprep.mubr.bf16.mxu0 %v807_v38  ;;  %1382 = vmatprep.mubr.bf16.mxu1 %v809_v39 }
 0x160   :  { %v744_v54 = vmax.f32 %v614_v47, 0.0  ;;  %v425_v55 = vadd.f32 %v424_v52, %v2135_v40  ;;  %v618_v56 = vadd.f32 %v617_v53, %v2137_v41  ;;  %v426_v57 = vpop.f32.mrb[63].mxu0  ;;  %v619_v58 = vpop.f32.mrb[63].mxu1  ;;  %1222 = vmatmul.mubr.bf16.gmra.mrb[120].mxu0 %v806_v37  ;;  %1383 = vmatmul.mubr.bf16.gmra.mrb[120].mxu1 %v808_v1  ;;  %v742_v62 = vmax.f32 %v421_v46, 0.0 }
 0x161   :  { %v745_v59 = vmax.f32 %v616_v51, 0.0  ;;  %v427_v60 = vadd.f32 %v426_v57, %v2139_v42  ;;  %v620_v61 = vadd.f32 %v619_v58, %v2141_v43  ;;  %v743_v2 = vmax.f32 %v423_v50, 0.0  ;;  %v2274_v42 = vld [vmem:[%s2408_s4] ss:$0 sm:$0xff] }
 0x162   :  { %v746_v63 = vmax.f32 %v425_v55, 0.0  ;;  %v748_v0 = vmax.f32 %v618_v56, 0.0 }
 0x163   :  { %v747_v3 = vmax.f32 %v427_v60, 0.0  ;;  %v749_v4 = vmax.f32 %v620_v61, 0.0 }
 0x164   :  { %v810_v5 = vpack.c.bf16 %v746_v63, %v742_v62  ;;  %v812_v6 = vpack.c.bf16 %v748_v0, %v744_v54 }
 0x165   :  { %v811_v40 = vpack.c.bf16 %v747_v3, %v743_v2  ;;  %v813_v7 = vpack.c.bf16 %v749_v4, %v745_v59 }
 0x167   :  { %1229 = vmatprep.mubr.bf16.mxu0 %v811_v40  ;;  %1390 = vmatprep.mubr.bf16.mxu1 %v813_v7 }
 0x168   :  { %1230 = vmatmul.mubr.bf16.gmra.mrb[124].mxu0 %v810_v5  ;;  %1391 = vmatmul.mubr.bf16.gmra.mrb[124].mxu1 %v812_v6 }
 0x1c3   :  { %v1532_v41 = vpop.f32.mrb[64].mxu0  ;;  %v1644_v8 = vpop.f32.mrb[64].mxu1 }
 0x1c4   :  { %v1533_v43 = vpop.f32.mrb[65].mxu0  ;;  %v1645_v9 = vpop.f32.mrb[65].mxu1 }
 0x1c5   :  { %v1534_v10 = vadd.f32 %v1533_v43, %v1532_v41  ;;  %v1646_v11 = vadd.f32 %v1645_v9, %v1644_v8  ;;  %v1535_v12 = vpop.f32.mrb[66].mxu0  ;;  %v1647_v13 = vpop.f32.mrb[66].mxu1 }
 0x1c6   :  { %v1536_v14 = vpop.f32.mrb[67].mxu0  ;;  %v1648_v15 = vpop.f32.mrb[67].mxu1 }
 0x1c7   :  { %v1112_v16 = vadd.f32 %v1534_v10, %v2274_v42  ;;  %v1537_v17 = vadd.f32 %v1536_v14, %v1535_v12  ;;  %v1649_v18 = vadd.f32 %v1648_v15, %v1647_v13 }
 0x1c9   :  { %v1273_v19 = vadd.f32 %v1646_v11, %v1112_v16  ;;  %v1115_v20 = vadd.f32 %v1537_v17, %v2274_v42 }
 0x1cb   :  { %1399 = vst [vmem:[%s2409_s5] sm:$0xff] %v1273_v19  ;;  %v1276_v21 = vadd.f32 %v1649_v18, %v1115_v20  ;;  %v1538_v22 = vpop.f32.mrb[68].mxu0  ;;  %v1650_v23 = vpop.f32.mrb[68].mxu1 }
 0x1cc   :  { %v1539_v24 = vpop.f32.mrb[69].mxu0  ;;  %v1651_v25 = vpop.f32.mrb[69].mxu1 }
 0x1cd   :  { %1400 = vst [vmem:[%s2409_s5 + $0x8] sm:$0xff] %v1276_v21  ;;  %v1540_v26 = vadd.f32 %v1539_v24, %v1538_v22  ;;  %v1652_v27 = vadd.f32 %v1651_v25, %v1650_v23  ;;  %v1541_v28 = vpop.f32.mrb[70].mxu0  ;;  %v1653_v29 = vpop.f32.mrb[70].mxu1 }
 0x1ce   :  { %v1542_v30 = vpop.f32.mrb[71].mxu0  ;;  %v1654_v31 = vpop.f32.mrb[71].mxu1 }
 0x1cf   :  { %v1120_v32 = vadd.f32 %v1540_v26, %v2274_v42  ;;  %v1543_v33 = vadd.f32 %v1542_v30, %v1541_v28  ;;  %v1655_v34 = vadd.f32 %v1654_v31, %v1653_v29 }
 0x1d1   :  { %v1281_v35 = vadd.f32 %v1652_v27, %v1120_v32  ;;  %v1123_v36 = vadd.f32 %v1543_v33, %v2274_v42 }
 0x1d3   :  { %1401 = vst [vmem:[%s2409_s5 + $0x10] sm:$0xff] %v1281_v35  ;;  %v1284_v37 = vadd.f32 %v1655_v34, %v1123_v36  ;;  %v1544_v1 = vpop.f32.mrb[72].mxu0  ;;  %v1656_v38 = vpop.f32.mrb[72].mxu1 }
 0x1d4   :  { %v1545_v39 = vpop.f32.mrb[73].mxu0  ;;  %v1657_v44 = vpop.f32.mrb[73].mxu1 }
 0x1d5   :  { %1402 = vst [vmem:[%s2409_s5 + $0x18] sm:$0xff] %v1284_v37  ;;  %v1546_v45 = vadd.f32 %v1545_v39, %v1544_v1  ;;  %v1658_v46 = vadd.f32 %v1657_v44, %v1656_v38  ;;  %v1547_v47 = vpop.f32.mrb[74].mxu0  ;;  %v1659_v48 = vpop.f32.mrb[74].mxu1 }
 0x1d6   :  { %v1548_v49 = vpop.f32.mrb[75].mxu0  ;;  %v1660_v50 = vpop.f32.mrb[75].mxu1 }
 0x1d7   :  { %v1128_v51 = vadd.f32 %v1546_v45, %v2274_v42  ;;  %v1549_v52 = vadd.f32 %v1548_v49, %v1547_v47  ;;  %v1661_v53 = vadd.f32 %v1660_v50, %v1659_v48 }
 0x1d9   :  { %v1289_v54 = vadd.f32 %v1658_v46, %v1128_v51  ;;  %v1131_v55 = vadd.f32 %v1549_v52, %v2274_v42 }
 0x1db   :  { %1403 = vst [vmem:[%s2409_s5 + $0x20] sm:$0xff] %v1289_v54  ;;  %v1292_v56 = vadd.f32 %v1661_v53, %v1131_v55  ;;  %v1550_v57 = vpop.f32.mrb[76].mxu0  ;;  %v1662_v58 = vpop.f32.mrb[76].mxu1 }
 0x1dc   :  { %v1551_v59 = vpop.f32.mrb[77].mxu0  ;;  %v1663_v60 = vpop.f32.mrb[77].mxu1 }
 0x1dd   :  { %1404 = vst [vmem:[%s2409_s5 + $0x28] sm:$0xff] %v1292_v56  ;;  %v1552_v61 = vadd.f32 %v1551_v59, %v1550_v57  ;;  %v1664_v62 = vadd.f32 %v1663_v60, %v1662_v58  ;;  %v1553_v63 = vpop.f32.mrb[78].mxu0  ;;  %v1665_v0 = vpop.f32.mrb[78].mxu1 }
 0x1de   :  { %v1554_v2 = vpop.f32.mrb[79].mxu0  ;;  %v1666_v3 = vpop.f32.mrb[79].mxu1 }
 0x1df   :  { %v1136_v4 = vadd.f32 %v1552_v61, %v2274_v42  ;;  %v1555_v5 = vadd.f32 %v1554_v2, %v1553_v63  ;;  %v1667_v6 = vadd.f32 %v1666_v3, %v1665_v0 }
 0x1e1   :  { %v1297_v40 = vadd.f32 %v1664_v62, %v1136_v4  ;;  %v1139_v7 = vadd.f32 %v1555_v5, %v2274_v42 }
 0x1e3   :  { %1405 = vst [vmem:[%s2409_s5 + $0x30] sm:$0xff] %v1297_v40  ;;  %v1300_v41 = vadd.f32 %v1667_v6, %v1139_v7  ;;  %v1556_v8 = vpop.f32.mrb[80].mxu0  ;;  %v1668_v43 = vpop.f32.mrb[80].mxu1 }
 0x1e4   :  { %v1557_v9 = vpop.f32.mrb[81].mxu0  ;;  %v1669_v10 = vpop.f32.mrb[81].mxu1 }
 0x1e5   :  { %1406 = vst [vmem:[%s2409_s5 + $0x38] sm:$0xff] %v1300_v41  ;;  %v1558_v11 = vadd.f32 %v1557_v9, %v1556_v8  ;;  %v1670_v12 = vadd.f32 %v1669_v10, %v1668_v43  ;;  %v1559_v13 = vpop.f32.mrb[82].mxu0  ;;  %v1671_v14 = vpop.f32.mrb[82].mxu1 }
 0x1e6   :  { %v1560_v15 = vpop.f32.mrb[83].mxu0  ;;  %v1672_v16 = vpop.f32.mrb[83].mxu1 }
 0x1e7   :  { %v1144_v17 = vadd.f32 %v1558_v11, %v2274_v42  ;;  %v1561_v18 = vadd.f32 %v1560_v15, %v1559_v13  ;;  %v1673_v19 = vadd.f32 %v1672_v16, %v1671_v14 }
 0x1e9   :  { %v1305_v20 = vadd.f32 %v1670_v12, %v1144_v17  ;;  %v1147_v21 = vadd.f32 %v1561_v18, %v2274_v42 }
 0x1eb   :  { %1407 = vst [vmem:[%s2409_s5 + $0x40] sm:$0xff] %v1305_v20  ;;  %v1308_v22 = vadd.f32 %v1673_v19, %v1147_v21  ;;  %v1562_v23 = vpop.f32.mrb[84].mxu0  ;;  %v1674_v24 = vpop.f32.mrb[84].mxu1 }
 0x1ec   :  { %v1563_v25 = vpop.f32.mrb[85].mxu0  ;;  %v1675_v26 = vpop.f32.mrb[85].mxu1 }
 0x1ed   :  { %1408 = vst [vmem:[%s2409_s5 + $0x48] sm:$0xff] %v1308_v22  ;;  %v1564_v27 = vadd.f32 %v1563_v25, %v1562_v23  ;;  %v1676_v28 = vadd.f32 %v1675_v26, %v1674_v24  ;;  %v1565_v29 = vpop.f32.mrb[86].mxu0  ;;  %v1677_v30 = vpop.f32.mrb[86].mxu1 }
 0x1ee   :  { %v1566_v31 = vpop.f32.mrb[87].mxu0  ;;  %v1678_v32 = vpop.f32.mrb[87].mxu1 }
 0x1ef   :  { %v1152_v33 = vadd.f32 %v1564_v27, %v2274_v42  ;;  %v1567_v34 = vadd.f32 %v1566_v31, %v1565_v29  ;;  %v1679_v35 = vadd.f32 %v1678_v32, %v1677_v30 }
 0x1f1   :  { %v1313_v36 = vadd.f32 %v1676_v28, %v1152_v33  ;;  %v1155_v37 = vadd.f32 %v1567_v34, %v2274_v42 }
 0x1f3   :  { %1409 = vst [vmem:[%s2409_s5 + $0x50] sm:$0xff] %v1313_v36  ;;  %v1316_v1 = vadd.f32 %v1679_v35, %v1155_v37  ;;  %v1568_v38 = vpop.f32.mrb[88].mxu0  ;;  %v1680_v39 = vpop.f32.mrb[88].mxu1 }
 0x1f4   :  { %v1569_v44 = vpop.f32.mrb[89].mxu0  ;;  %v1681_v45 = vpop.f32.mrb[89].mxu1 }
 0x1f5   :  { %1410 = vst [vmem:[%s2409_s5 + $0x58] sm:$0xff] %v1316_v1  ;;  %v1570_v46 = vadd.f32 %v1569_v44, %v1568_v38  ;;  %v1682_v47 = vadd.f32 %v1681_v45, %v1680_v39  ;;  %v1571_v48 = vpop.f32.mrb[90].mxu0  ;;  %v1683_v49 = vpop.f32.mrb[90].mxu1 }
 0x1f6   :  { %v1572_v50 = vpop.f32.mrb[91].mxu0  ;;  %v1684_v51 = vpop.f32.mrb[91].mxu1 }
 0x1f7   :  { %v1160_v52 = vadd.f32 %v1570_v46, %v2274_v42  ;;  %v1573_v53 = vadd.f32 %v1572_v50, %v1571_v48  ;;  %v1685_v54 = vadd.f32 %v1684_v51, %v1683_v49 }
 0x1f9   :  { %v1321_v55 = vadd.f32 %v1682_v47, %v1160_v52  ;;  %v1163_v56 = vadd.f32 %v1573_v53, %v2274_v42 }
 0x1fb   :  { %1411 = vst [vmem:[%s2409_s5 + $0x60] sm:$0xff] %v1321_v55  ;;  %v1324_v57 = vadd.f32 %v1685_v54, %v1163_v56  ;;  %v1574_v58 = vpop.f32.mrb[92].mxu0  ;;  %v1686_v59 = vpop.f32.mrb[92].mxu1 }
 0x1fc   :  { %v1575_v60 = vpop.f32.mrb[93].mxu0  ;;  %v1687_v61 = vpop.f32.mrb[93].mxu1 }
 0x1fd   :  { %1412 = vst [vmem:[%s2409_s5 + $0x68] sm:$0xff] %v1324_v57  ;;  %v1576_v62 = vadd.f32 %v1575_v60, %v1574_v58  ;;  %v1688_v63 = vadd.f32 %v1687_v61, %v1686_v59  ;;  %v1577_v0 = vpop.f32.mrb[94].mxu0  ;;  %v1689_v2 = vpop.f32.mrb[94].mxu1 }
 0x1fe   :  { %v1578_v3 = vpop.f32.mrb[95].mxu0  ;;  %v1690_v4 = vpop.f32.mrb[95].mxu1 }
 0x1ff   :  { %v1168_v5 = vadd.f32 %v1576_v62, %v2274_v42  ;;  %v1579_v6 = vadd.f32 %v1578_v3, %v1577_v0  ;;  %v1691_v40 = vadd.f32 %v1690_v4, %v1689_v2 }
 0x201   :  { %v1329_v7 = vadd.f32 %v1688_v63, %v1168_v5  ;;  %v1171_v41 = vadd.f32 %v1579_v6, %v2274_v42 }
 0x203   :  { %1413 = vst [vmem:[%s2409_s5 + $0x70] sm:$0xff] %v1329_v7  ;;  %v1332_v8 = vadd.f32 %v1691_v40, %v1171_v41  ;;  %v1580_v43 = vpop.f32.mrb[96].mxu0  ;;  %v1692_v9 = vpop.f32.mrb[96].mxu1 }
 0x204   :  { %v1581_v10 = vpop.f32.mrb[97].mxu0  ;;  %v1693_v11 = vpop.f32.mrb[97].mxu1 }
 0x205   :  { %1414 = vst [vmem:[%s2409_s5 + $0x78] sm:$0xff] %v1332_v8  ;;  %v1582_v12 = vadd.f32 %v1581_v10, %v1580_v43  ;;  %v1694_v13 = vadd.f32 %v1693_v11, %v1692_v9  ;;  %v1583_v14 = vpop.f32.mrb[98].mxu0  ;;  %v1695_v15 = vpop.f32.mrb[98].mxu1 }
 0x206   :  { %v1584_v16 = vpop.f32.mrb[99].mxu0  ;;  %v1696_v17 = vpop.f32.mrb[99].mxu1 }
 0x207   :  { %v1176_v18 = vadd.f32 %v1582_v12, %v2274_v42  ;;  %v1585_v19 = vadd.f32 %v1584_v16, %v1583_v14  ;;  %v1697_v20 = vadd.f32 %v1696_v17, %v1695_v15 }
 0x209   :  { %v1337_v21 = vadd.f32 %v1694_v13, %v1176_v18  ;;  %v1179_v22 = vadd.f32 %v1585_v19, %v2274_v42 }
 0x20b   :  { %1415 = vst [vmem:[%s2409_s5 + $0x80] sm:$0xff] %v1337_v21  ;;  %v1340_v23 = vadd.f32 %v1697_v20, %v1179_v22  ;;  %v1586_v24 = vpop.f32.mrb[100].mxu0  ;;  %v1698_v25 = vpop.f32.mrb[100].mxu1 }
 0x20c   :  { %v1587_v26 = vpop.f32.mrb[101].mxu0  ;;  %v1699_v27 = vpop.f32.mrb[101].mxu1 }
 0x20d   :  { %1416 = vst [vmem:[%s2409_s5 + $0x88] sm:$0xff] %v1340_v23  ;;  %v1588_v28 = vadd.f32 %v1587_v26, %v1586_v24  ;;  %v1700_v29 = vadd.f32 %v1699_v27, %v1698_v25  ;;  %v1589_v30 = vpop.f32.mrb[102].mxu0  ;;  %v1701_v31 = vpop.f32.mrb[102].mxu1 }
 0x20e   :  { %v1590_v32 = vpop.f32.mrb[103].mxu0  ;;  %v1702_v33 = vpop.f32.mrb[103].mxu1 }
 0x20f   :  { %v1184_v34 = vadd.f32 %v1588_v28, %v2274_v42  ;;  %v1591_v35 = vadd.f32 %v1590_v32, %v1589_v30  ;;  %v1703_v36 = vadd.f32 %v1702_v33, %v1701_v31 }
 0x211   :  { %v1345_v37 = vadd.f32 %v1700_v29, %v1184_v34  ;;  %v1187_v1 = vadd.f32 %v1591_v35, %v2274_v42 }
 0x213   :  { %1417 = vst [vmem:[%s2409_s5 + $0x90] sm:$0xff] %v1345_v37  ;;  %v1348_v38 = vadd.f32 %v1703_v36, %v1187_v1  ;;  %v1592_v39 = vpop.f32.mrb[104].mxu0  ;;  %v1704_v44 = vpop.f32.mrb[104].mxu1 }
 0x214   :  { %v1593_v45 = vpop.f32.mrb[105].mxu0  ;;  %v1705_v46 = vpop.f32.mrb[105].mxu1 }
 0x215   :  { %1418 = vst [vmem:[%s2409_s5 + $0x98] sm:$0xff] %v1348_v38  ;;  %v1594_v47 = vadd.f32 %v1593_v45, %v1592_v39  ;;  %v1706_v48 = vadd.f32 %v1705_v46, %v1704_v44  ;;  %v1595_v49 = vpop.f32.mrb[106].mxu0  ;;  %v1707_v50 = vpop.f32.mrb[106].mxu1 }
 0x216   :  { %v1596_v51 = vpop.f32.mrb[107].mxu0  ;;  %v1708_v52 = vpop.f32.mrb[107].mxu1 }
 0x217   :  { %v1192_v53 = vadd.f32 %v1594_v47, %v2274_v42  ;;  %v1597_v54 = vadd.f32 %v1596_v51, %v1595_v49  ;;  %v1709_v55 = vadd.f32 %v1708_v52, %v1707_v50 }
 0x219   :  { %v1353_v56 = vadd.f32 %v1706_v48, %v1192_v53  ;;  %v1195_v57 = vadd.f32 %v1597_v54, %v2274_v42 }
 0x21b   :  { %1419 = vst [vmem:[%s2409_s5 + $0xa0] sm:$0xff] %v1353_v56  ;;  %v1356_v58 = vadd.f32 %v1709_v55, %v1195_v57  ;;  %v1598_v59 = vpop.f32.mrb[108].mxu0  ;;  %v1710_v60 = vpop.f32.mrb[108].mxu1 }
 0x21c   :  { %v1599_v61 = vpop.f32.mrb[109].mxu0  ;;  %v1711_v62 = vpop.f32.mrb[109].mxu1 }
 0x21d   :  { %1420 = vst [vmem:[%s2409_s5 + $0xa8] sm:$0xff] %v1356_v58  ;;  %v1600_v63 = vadd.f32 %v1599_v61, %v1598_v59  ;;  %v1712_v0 = vadd.f32 %v1711_v62, %v1710_v60  ;;  %v1601_v2 = vpop.f32.mrb[110].mxu0  ;;  %v1713_v3 = vpop.f32.mrb[110].mxu1 }
 0x21e   :  { %v1602_v4 = vpop.f32.mrb[111].mxu0  ;;  %v1714_v5 = vpop.f32.mrb[111].mxu1 }
 0x21f   :  { %v1200_v6 = vadd.f32 %v1600_v63, %v2274_v42  ;;  %v1603_v40 = vadd.f32 %v1602_v4, %v1601_v2  ;;  %v1715_v7 = vadd.f32 %v1714_v5, %v1713_v3 }
 0x221   :  { %v1361_v41 = vadd.f32 %v1712_v0, %v1200_v6  ;;  %v1203_v8 = vadd.f32 %v1603_v40, %v2274_v42 }
 0x223   :  { %1421 = vst [vmem:[%s2409_s5 + $0xb0] sm:$0xff] %v1361_v41  ;;  %v1364_v43 = vadd.f32 %v1715_v7, %v1203_v8  ;;  %v1604_v9 = vpop.f32.mrb[112].mxu0  ;;  %v1716_v10 = vpop.f32.mrb[112].mxu1 }
 0x224   :  { %v1605_v11 = vpop.f32.mrb[113].mxu0  ;;  %v1717_v12 = vpop.f32.mrb[113].mxu1 }
 0x225   :  { %1422 = vst [vmem:[%s2409_s5 + $0xb8] sm:$0xff] %v1364_v43  ;;  %v1606_v13 = vadd.f32 %v1605_v11, %v1604_v9  ;;  %v1718_v14 = vadd.f32 %v1717_v12, %v1716_v10  ;;  %v1607_v15 = vpop.f32.mrb[114].mxu0  ;;  %v1719_v16 = vpop.f32.mrb[114].mxu1 }
 0x226   :  { %v1608_v17 = vpop.f32.mrb[115].mxu0  ;;  %v1720_v18 = vpop.f32.mrb[115].mxu1 }
 0x227   :  { %v1208_v19 = vadd.f32 %v1606_v13, %v2274_v42  ;;  %v1609_v20 = vadd.f32 %v1608_v17, %v1607_v15  ;;  %v1721_v21 = vadd.f32 %v1720_v18, %v1719_v16 }
 0x229   :  { %v1369_v22 = vadd.f32 %v1718_v14, %v1208_v19  ;;  %v1211_v23 = vadd.f32 %v1609_v20, %v2274_v42 }
 0x22b   :  { %1423 = vst [vmem:[%s2409_s5 + $0xc0] sm:$0xff] %v1369_v22  ;;  %v1372_v24 = vadd.f32 %v1721_v21, %v1211_v23  ;;  %v1610_v25 = vpop.f32.mrb[116].mxu0  ;;  %v1722_v26 = vpop.f32.mrb[116].mxu1 }
 0x22c   :  { %v1611_v27 = vpop.f32.mrb[117].mxu0  ;;  %v1723_v28 = vpop.f32.mrb[117].mxu1 }
 0x22d   :  { %1424 = vst [vmem:[%s2409_s5 + $0xc8] sm:$0xff] %v1372_v24  ;;  %v1612_v29 = vadd.f32 %v1611_v27, %v1610_v25  ;;  %v1724_v30 = vadd.f32 %v1723_v28, %v1722_v26  ;;  %v1613_v31 = vpop.f32.mrb[118].mxu0  ;;  %v1725_v32 = vpop.f32.mrb[118].mxu1 }
 0x22e   :  { %v1614_v33 = vpop.f32.mrb[119].mxu0  ;;  %v1726_v34 = vpop.f32.mrb[119].mxu1 }
 0x22f   :  { %v1216_v35 = vadd.f32 %v1612_v29, %v2274_v42  ;;  %v1615_v36 = vadd.f32 %v1614_v33, %v1613_v31  ;;  %v1727_v37 = vadd.f32 %v1726_v34, %v1725_v32 }
 0x231   :  { %v1377_v1 = vadd.f32 %v1724_v30, %v1216_v35  ;;  %v1219_v38 = vadd.f32 %v1615_v36, %v2274_v42 }
 0x233   :  { %1425 = vst [vmem:[%s2409_s5 + $0xd0] sm:$0xff] %v1377_v1  ;;  %v1380_v39 = vadd.f32 %v1727_v37, %v1219_v38  ;;  %v1616_v44 = vpop.f32.mrb[120].mxu0  ;;  %v1728_v45 = vpop.f32.mrb[120].mxu1 }
 0x234   :  { %v1617_v46 = vpop.f32.mrb[121].mxu0  ;;  %v1729_v47 = vpop.f32.mrb[121].mxu1 }
 0x235   :  { %1426 = vst [vmem:[%s2409_s5 + $0xd8] sm:$0xff] %v1380_v39  ;;  %v1618_v48 = vadd.f32 %v1617_v46, %v1616_v44  ;;  %v1730_v49 = vadd.f32 %v1729_v47, %v1728_v45  ;;  %v1619_v50 = vpop.f32.mrb[122].mxu0  ;;  %v1731_v51 = vpop.f32.mrb[122].mxu1 }
 0x236   :  { %v1620_v52 = vpop.f32.mrb[123].mxu0  ;;  %v1732_v53 = vpop.f32.mrb[123].mxu1 }
 0x237   :  { %v1224_v54 = vadd.f32 %v1618_v48, %v2274_v42  ;;  %v1621_v55 = vadd.f32 %v1620_v52, %v1619_v50  ;;  %v1733_v56 = vadd.f32 %v1732_v53, %v1731_v51 }
 0x239   :  { %v1385_v57 = vadd.f32 %v1730_v49, %v1224_v54  ;;  %v1227_v58 = vadd.f32 %v1621_v55, %v2274_v42 }
 0x23b   :  { %1427 = vst [vmem:[%s2409_s5 + $0xe0] sm:$0xff] %v1385_v57  ;;  %v1388_v59 = vadd.f32 %v1733_v56, %v1227_v58  ;;  %v1622_v60 = vpop.f32.mrb[124].mxu0  ;;  %v1734_v61 = vpop.f32.mrb[124].mxu1 }
 0x23c   :  { %v1623_v62 = vpop.f32.mrb[125].mxu0  ;;  %v1735_v63 = vpop.f32.mrb[125].mxu1 }
 0x23d   :  { %1428 = vst [vmem:[%s2409_s5 + $0xe8] sm:$0xff] %v1388_v59  ;;  %v1624_v0 = vadd.f32 %v1623_v62, %v1622_v60  ;;  %v1736_v2 = vadd.f32 %v1735_v63, %v1734_v61  ;;  %v1625_v3 = vpop.f32.mrb[126].mxu0  ;;  %v1737_v4 = vpop.f32.mrb[126].mxu1 }
 0x23e   :  { %v1626_v5 = vpop.f32.mrb[127].mxu0  ;;  %v1738_v6 = vpop.f32.mrb[127].mxu1 }
 0x23f   :  { %v1232_v40 = vadd.f32 %v1624_v0, %v2274_v42  ;;  %v1627_v7 = vadd.f32 %v1626_v5, %v1625_v3  ;;  %v1739_v41 = vadd.f32 %v1738_v6, %v1737_v4 }
 0x241   :  { %v1393_v8 = vadd.f32 %v1736_v2, %v1232_v40  ;;  %v1235_v43 = vadd.f32 %v1627_v7, %v2274_v42 }
 0x243   :  { %1429 = vst [vmem:[%s2409_s5 + $0xf0] sm:$0xff] %v1393_v8  ;;  %v1396_v9 = vadd.f32 %v1739_v41, %v1235_v43 }
 0x245   :  { %1430 = vst [vmem:[%s2409_s5 + $0xf8] sm:$0xff] %v1396_v9 }

</bundles_post_ra>
